<compile_context>
chip_gen: v7x
topology: tpu7x:2x2x1
jax: 0.10.0
libtpu: 0.0.40
codegen_flags: <defaults>
</compile_context>

<pallas_src>
import functools

import jax
import jax.numpy as jnp
from jax.experimental import pallas as pl
from jax.experimental.pallas import tpu as pltpu


@functools.lru_cache(maxsize=None)
def _vmem_limit_bytes():
    """Generation-aware VMEM cap: ~half of physical VMEM (v7x 64 MiB -> 32 MiB,
    v5e/v6e 128 MiB -> 64 MiB), with a conservative fallback."""
    default = 32 * 1024 * 1024
    try:
        cap = getattr(pltpu.get_tpu_info(), "vmem_capacity_bytes", None)
    except Exception:  # pragma: no cover - info query not available
        cap = None
    if not cap:
        return default
    return int(min(cap // 2, 96 * 1024 * 1024))


def _point_tile(n, per_point_bytes, vmem_budget):
    """Largest lane-aligned N tile that fits the VMEM budget, preferring enough
    tiles to feed both v7x TensorCores and the accumulation pipeline."""
    cands = (32768, 16384, 8192, 4096, 2048, 1024, 512, 256, 128)
    cap = max(128, vmem_budget // (2 * per_point_bytes))
    divs = [c for c in cands if c <= cap and n % c == 0]
    for min_tiles in (4, 2):
        for c in divs:
            if n // c >= min_tiles:
                return c
    return divs[0] if divs else n


def _h_tile(h, per_row_bytes, vmem_budget):
    for c in (256, 128, 64, 32, 16, 8):
        if h % c == 0 and c * per_row_bytes <= vmem_budget // 2:
            return c
    return h


# ----------------------------------------------------------------------------
# Kernel 1: fused point MLP + masked segmented splat onto a coarse grid.
#   * MLP runs lane-dense / transposed: N (multiple of 128) on lanes, the tiny
#     channel dims (6 / 32 / 33) on sublanes; weights stay resident in VMEM.
#   * Splat = one-hot matmul on the MXU, accumulated straight into the
#     resident output block over the N reduction axis (sums AND counts come
#     out of the same matmul via the augmented ones-row of layer 2).
# ----------------------------------------------------------------------------
def _point_splat_kernel(cell_ref, mask_ref, xT_ref,
                        w1T_ref, b1_ref, w2aT_ref, b2a_ref, out_ref):
    @pl.when(pl.program_id(1) == 0)
    def _():
        out_ref[...] = jnp.zeros_like(out_ref)

    # --- fused shared point MLP; featsT never hits HBM -----------------------
    h = jnp.dot(w1T_ref[...], xT_ref[...],
                preferred_element_type=jnp.float32)                    # [HID, tn]
    h = jnp.maximum(h + b1_ref[...], 0.0)
    # w2aT / b2a carry an extra constant-one output row, so row F of feats_aug
    # is all ones: after masking it becomes the per-cell point count, folding
    # the count matmul into the feature matmul.
    feats_aug = jnp.dot(w2aT_ref[...], h.astype(jnp.bfloat16),
                        preferred_element_type=jnp.float32) + b2a_ref[...]  # [F+1, tn]
    stacked = (feats_aug * mask_ref[...]).astype(jnp.bfloat16)         # [F+1, tn]

    # --- one-hot splat: transposed (G, tn) bf16 via sublane broadcast --------
    g = out_ref.shape[2]
    giota = jax.lax.broadcasted_iota(jnp.int32, (g, cell_ref.shape[1]), 0)
    onehot_t = (cell_ref[...] == giota).astype(jnp.bfloat16)           # [G, tn]

    out_ref[0, :, :] += jax.lax.dot_general(
        stacked, onehot_t, (((1,), (1,)), ((), ())),
        preferred_element_type=jnp.float32)                            # [F+1, G]


def point_splat(cell, mask2d, xT, w1T, b1, w2T, b2, grid_cells, vmem_limit):
    cin, n = xT.shape
    hid = w1T.shape[0]
    f = w2T.shape[0]

    # Host-side (tiny): augment layer 2 with a constant-one output row.
    w2aT = jnp.concatenate([w2T, jnp.zeros((1, hid), w2T.dtype)], axis=0)
    b2a = jnp.concatenate([b2, jnp.ones((1, 1), b2.dtype)], axis=0)

    per_pt = 2 * (cin * 2 + 8) + (f + 1) * 6 + grid_cells * 2 + hid * 6
    tn = _point_tile(n, per_pt, vmem_limit)
    assert n % tn == 0, "N tile must divide N"
    num_tiles = n // tn
    ncores = 2 if num_tiles % 2 == 0 else 1     # v7x: split the N reduction over both TCs
    tiles_per_core = num_tiles // ncores

    def nmap(c, i):
        return (0, c * tiles_per_core + i)

    def resident(c, i):
        return (0, 0)

    return pl.pallas_call(
        _point_splat_kernel,
        out_shape=jax.ShapeDtypeStruct((ncores, f + 1, grid_cells), jnp.float32),
        grid=(ncores, tiles_per_core),
        in_specs=[
            pl.BlockSpec((1, tn), nmap),                  # cell ids, lane-dense
            pl.BlockSpec((1, tn), nmap),                  # mask, lane-dense
            pl.BlockSpec((cin, tn), nmap),                # point inputs (transposed)
            pl.BlockSpec((hid, cin), resident),           # layer-1 weights (resident)
            pl.BlockSpec((hid, 1), resident),
            pl.BlockSpec((f + 1, hid), resident),         # layer-2 weights (+ ones row)
            pl.BlockSpec((f + 1, 1), resident),
        ],
        out_specs=pl.BlockSpec((1, f + 1, grid_cells), lambda c, i: (c, 0, 0)),
        compiler_params=pltpu.CompilerParams(
            dimension_semantics=("parallel", "arbitrary"),
            vmem_limit_bytes=vmem_limit),
    )(cell, mask2d, xT.astype(jnp.bfloat16), w1T.astype(jnp.bfloat16), b1,
      w2aT.astype(jnp.bfloat16), b2a)


# ----------------------------------------------------------------------------
# Kernel 2: fused bilinear upsample (H direction) + 1x1-conv head (AsymFormer
# stand-in), tiled over image rows.  The W-direction upsample is precomputed
# once outside (grid-invariant & tiny).  One batched (th, h0) x (h0, K*W) MXU
# dot per row tile; RGB head + bias added in an f32 elementwise epilogue;
# stores are lane-dense over W.
# ----------------------------------------------------------------------------
def _up_head_kernel(mixedw_ref, wh_ref, rgb_ref, wrgb_ref, b_ref, o_ref):
    k, th, w_out = o_ref.shape
    up_all = jnp.dot(wh_ref[...], mixedw_ref[...],
                     preferred_element_type=jnp.float32)               # [th, K*W]
    r0 = rgb_ref[0, :, :]
    r1 = rgb_ref[1, :, :]
    r2 = rgb_ref[2, :, :]
    for kk in range(k):                                   # K is small & static
        o_ref[kk, :, :] = (up_all[:, kk * w_out:(kk + 1) * w_out]
                           + r0 * wrgb_ref[kk, 0]
                           + r1 * wrgb_ref[kk, 1]
                           + r2 * wrgb_ref[kk, 2]
                           + b_ref[kk])


def fused_upsample_head(mixedw, wh, rgb, w_rgb, b_head, k, vmem_limit):
    h0, kw = mixedw.shape
    w_out = kw // k
    h_out = wh.shape[0]
    per_row = (k * w_out * 4 + 3 * w_out * 4) * 2 + h0 * 2
    th = _h_tile(h_out, per_row, vmem_limit)
    assert h_out % th == 0, "row tile must divide output height"
    return pl.pallas_call(
        _up_head_kernel,
        out_shape=jax.ShapeDtypeStruct((k, h_out, w_out), jnp.float32),
        grid=(h_out // th,),
        in_specs=[
            pl.BlockSpec((h0, kw), lambda i: (0, 0)),          # W-upsampled coarse feats
            pl.BlockSpec((th, h0), lambda i: (i, 0)),          # H-direction bilinear rows
            pl.BlockSpec((3, th, w_out), lambda i: (0, i, 0)),  # RGB tile (kept f32)
            pl.BlockSpec(memory_space=pltpu.MemorySpace.SMEM),  # w_rgb scalars
            pl.BlockSpec(memory_space=pltpu.MemorySpace.SMEM),  # bias scalars
        ],
        out_specs=pl.BlockSpec((k, th, w_out), lambda i: (0, i, 0)),
        compiler_params=pltpu.CompilerParams(
            dimension_semantics=("parallel",),
            vmem_limit_bytes=vmem_limit),
    )(mixedw.astype(jnp.bfloat16), wh.astype(jnp.bfloat16), rgb, w_rgb, b_head)


# ----------------------------------------------------------------------------
# Helpers (host-side, tiny)
# ----------------------------------------------------------------------------
def _bilinear_matrix(out_size, in_size):
    """Dense [out, in] interpolation matrix matching F.interpolate(bilinear,
    align_corners=False) along one axis (built without scatter)."""
    dst = jnp.arange(out_size, dtype=jnp.float32)
    src = (dst + 0.5) * (in_size / out_size) - 0.5
    src = jnp.clip(src, 0.0, float(in_size - 1))
    i0 = jnp.clip(jnp.floor(src).astype(jnp.int32), 0, in_size - 1)
    i1 = jnp.clip(i0 + 1, 0, in_size - 1)
    w1 = src - i0.astype(jnp.float32)
    w0 = 1.0 - w1
    cols = jnp.arange(in_size, dtype=jnp.int32)
    return (w0[:, None] * (cols[None, :] == i0[:, None]).astype(jnp.float32)
            + w1[:, None] * (cols[None, :] == i1[:, None]).astype(jnp.float32))


# ----------------------------------------------------------------------------
# Forward pass glue (matches the PyTorch module's 'pointnetpp' branch)
# ----------------------------------------------------------------------------
def gs3dgs_forward(params, features, rendering, mask, img_size, coarse_hw=(8, 8)):
    vmem_limit = _vmem_limit_bytes()

    # --- pc_feature_extractor (pointnetpp branch) -----------------------------
    # TODO(synk): external PointNet++ replaced by a deterministic shared MLP
    # (fused into the splat kernel below so its output never hits HBM).
    x = features[0]                                        # (N, Cin)
    n = x.shape[0]
    xT = x.T                                               # (Cin, N) lane-dense

    if mask is not None:
        mask2d = mask[None].astype(jnp.float32)            # mask.unsqueeze(0)
    else:
        mask2d = jnp.ones((1, n), jnp.float32)

    # --- render(...)['render_object'] stand-in --------------------------------
    # TODO(synk): the Gaussian-splatting rasterizer has no Pallas equivalent;
    # this deterministic stand-in scatter-means masked point features onto a
    # coarse grid via an MXU one-hot matmul.
    h0, w0 = coarse_hw
    xyz = x[:, :3]
    lo = xyz.min(axis=0)
    hi = xyz.max(axis=0)
    uv = (xyz[:, :2] - lo[:2]) / jnp.maximum(hi[:2] - lo[:2], 1e-6)
    iy = jnp.clip((uv[:, 1] * h0).astype(jnp.int32), 0, h0 - 1)
    ix = jnp.clip((uv[:, 0] * w0).astype(jnp.int32), 0, w0 - 1)
    cell = (iy * w0 + ix).astype(jnp.int32)[None, :]       # (1, N) lane-dense

    partials = point_splat(cell, mask2d, xT, params["w1T"], params["b1"],
                           params["w2T"], params["b2"], h0 * w0, vmem_limit)

    # Tiny coarse-resolution epilogue (exact across the per-core split: counts
    # are combined BEFORE the divide).  All tensors here are (F+1, G)-sized.
    f = params["w2T"].shape[0]
    sums = partials.sum(axis=0)                            # (F+1, G)
    img = sums[:f] / jnp.maximum(sums[f:f + 1], 1.0)       # masked segmented mean
    mixed = params["w_feat"] @ img                         # (K, G): head's feature half
    k = mixed.shape[0]
    mixed3 = mixed.reshape(k, h0, w0)

    # --- F.interpolate(bilinear, align_corners=False) fused with head ---------
    # TODO(synk): AsymFormer head is external; stand-in is a fused 1x1-conv
    # classifier over [rendering RGB, upsampled rendered features].
    w_img, h_img = img_size[0], img_size[1]
    wh = _bilinear_matrix(h_img, h0)                       # (H, H0)
    ww = _bilinear_matrix(w_img, w0).T                     # (W0, W)
    # W-direction upsample is grid-invariant and tiny -> precompute once
    # (hoisted out of the row-tiled kernel, per perf review).
    mixedw = jnp.einsum("khx,xw->hkw", mixed3, ww).reshape(h0, k * w_img)

    logits = fused_upsample_head(mixedw, wh, rendering[0], params["w_rgb"],
                                 params["b_head"], k, vmem_limit)       # (K, H, W)
    return logits[None]                                    # (1, K, H, W)


def init_params(key, c_in=6, hidden=32, feat=32, num_classes=4):
    ks = jax.random.split(key, 4)
    return {
        "w1T": jax.random.normal(ks[0], (hidden, c_in), jnp.float32) * 0.1,
        "b1": jnp.zeros((hidden, 1), jnp.float32),
        "w2T": jax.random.normal(ks[1], (feat, hidden), jnp.float32) * 0.1,
        "b2": jnp.zeros((feat, 1), jnp.float32),
        "w_feat": jax.random.normal(ks[2], (num_classes, feat), jnp.float32) * 0.1,
        "w_rgb": jax.random.normal(ks[3], (num_classes, 3), jnp.float32) * 0.1,
        "b_head": jnp.zeros((num_classes,), jnp.float32),
    }


if __name__ == "__main__":
    key = jax.random.PRNGKey(0)
    k_feat, k_img, k_param = jax.random.split(key, 3)

    N, C_IN, HID, FEAT, NUM_CLASSES = 4096, 6, 32, 32, 4
    IMG_SIZE = (128, 16)  # (W, H) as in the PyTorch module; W lane-dense

    features = jax.random.normal(k_feat, (1, N, C_IN), jnp.float32)   # [B=1, N, xyz+rgb]
    rendering = jax.random.normal(k_img, (1, 3, IMG_SIZE[1], IMG_SIZE[0]), jnp.float32)
    mask = jnp.ones((N,), jnp.float32)

    params = init_params(k_param, c_in=C_IN, hidden=HID, feat=FEAT,
                         num_classes=NUM_CLASSES)

    fwd = jax.jit(lambda p, f_, r, m: gs3dgs_forward(p, f_, r, m, IMG_SIZE))
    logits = fwd(params, features, rendering, mask)
    jax.block_until_ready(logits)

    assert logits.shape == (1, NUM_CLASSES, IMG_SIZE[1], IMG_SIZE[0])
    assert bool(jnp.all(jnp.isfinite(logits)))
    print("KERNEL_OK")
</pallas_src>

<mosaic_0001>
module attributes {stable_mosaic.version = 11 : i64} {
  func.func @_point_splat_kernel(%arg0: i32, %arg1: i32, %arg2: memref<1x1024xi32, #tpu.memory_space<vmem>>, %arg3: memref<1x1024xf32, #tpu.memory_space<vmem>>, %arg4: memref<6x1024xbf16, #tpu.memory_space<vmem>>, %arg5: memref<32x6xbf16, #tpu.memory_space<vmem>>, %arg6: memref<32x1xf32, #tpu.memory_space<vmem>>, %arg7: memref<33x32xbf16, #tpu.memory_space<vmem>>, %arg8: memref<33x1xf32, #tpu.memory_space<vmem>>, %arg9: memref<1x33x64xf32, #tpu.memory_space<vmem>>) attributes {dimension_semantics = [#tpu.dimension_semantics<parallel>, #tpu.dimension_semantics<arbitrary>], iteration_bounds = array<i64: 2, 2>, scalar_prefetch = 0 : i64, scratch_operands = 0 : i64, tpu.core_type = #tpu.core_type<tc>, window_params = [{transform_indices = @transform_0, window_bounds = array<i64: 1, 1024>}, {transform_indices = @transform_1, window_bounds = array<i64: 1, 1024>}, {transform_indices = @transform_2, window_bounds = array<i64: 6, 1024>}, {pipeline_mode = #tpu.pipeline_mode<synchronous>, transform_indices = @transform_3, window_bounds = array<i64: 32, 6>}, {pipeline_mode = #tpu.pipeline_mode<synchronous>, transform_indices = @transform_4, window_bounds = array<i64: 32, 1>}, {pipeline_mode = #tpu.pipeline_mode<synchronous>, transform_indices = @transform_5, window_bounds = array<i64: 33, 32>}, {pipeline_mode = #tpu.pipeline_mode<synchronous>, transform_indices = @transform_6, window_bounds = array<i64: 33, 1>}, {transform_indices = @transform_7, window_bounds = array<i64: 1, 33, 64>}]} {
    %c0_i32 = arith.constant 0 : i32
    %0 = arith.cmpi eq, %arg1, %c0_i32 : i32
    %1 = arith.extui %0 : i1 to i32
    %c0_i32_0 = arith.constant 0 : i32
    %2 = arith.cmpi ne, %1, %c0_i32_0 : i32
    scf.if %2 {
      %cst_23 = arith.constant 0.000000e+00 : f32
      %35 = vector.broadcast %cst_23 : f32 to vector<1x33x64xf32>
      %c0_24 = arith.constant 0 : index
      %c0_25 = arith.constant 0 : index
      %c0_26 = arith.constant 0 : index
      %36 = vector.load %arg9[%c0_24, %c0_25, %c0_26] : memref<1x33x64xf32, #tpu.memory_space<vmem>>, vector<1x33x64xf32>
      tpu.vector_store %arg9[%c0_24, %c0_25, %c0_26], %35 {strides = array<i32>} : memref<1x33x64xf32, #tpu.memory_space<vmem>>, vector<1x33x64xf32>,
    } else {
    }
    %c0 = arith.constant 0 : index
    %c0_1 = arith.constant 0 : index
    %3 = vector.load %arg5[%c0, %c0_1] : memref<32x6xbf16, #tpu.memory_space<vmem>>, vector<32x6xbf16>
    %c0_2 = arith.constant 0 : index
    %c0_3 = arith.constant 0 : index
    %4 = vector.load %arg4[%c0_2, %c0_3] : memref<6x1024xbf16, #tpu.memory_space<vmem>>, vector<6x1024xbf16>
    %cst = arith.constant dense<0.000000e+00> : vector<32x1024xf32>
    %5 = tpu.matmul %3, %4, %cst {dimension_numbers = #tpu.dot_dimension_numbers<[1], [0], [0], [1], [0, 0, 1, 1], [], []>} : vector<32x6xbf16>, vector<6x1024xbf16>, vector<32x1024xf32> -> vector<32x1024xf32>
    %c0_4 = arith.constant 0 : index
    %c0_5 = arith.constant 0 : index
    %6 = vector.load %arg6[%c0_4, %c0_5] : memref<32x1xf32, #tpu.memory_space<vmem>>, vector<32x1xf32>
    %7 = vector.broadcast %6 : vector<32x1xf32> to vector<32x1024xf32>
    %8 = arith.addf %5, %7 : vector<32x1024xf32>
    %cst_6 = arith.constant 0.000000e+00 : f32
    %9 = vector.broadcast %cst_6 : f32 to vector<32x1024xf32>
    %10 = arith.maximumf %8, %9 : vector<32x1024xf32>
    %c0_7 = arith.constant 0 : index
    %c0_8 = arith.constant 0 : index
    %11 = vector.load %arg7[%c0_7, %c0_8] : memref<33x32xbf16, #tpu.memory_space<vmem>>, vector<33x32xbf16>
    %12 = arith.truncf %10 : vector<32x1024xf32> to vector<32x1024xbf16>
    %cst_9 = arith.constant dense<0.000000e+00> : vector<33x1024xf32>
    %13 = tpu.matmul %11, %12, %cst_9 {dimension_numbers = #tpu.dot_dimension_numbers<[1], [0], [0], [1], [0, 0, 1, 1], [], []>} : vector<33x32xbf16>, vector<32x1024xbf16>, vector<33x1024xf32> -> vector<33x1024xf32>
    %c0_10 = arith.constant 0 : index
    %c0_11 = arith.constant 0 : index
    %14 = vector.load %arg8[%c0_10, %c0_11] : memref<33x1xf32, #tpu.memory_space<vmem>>, vector<33x1xf32>
    %15 = vector.broadcast %14 : vector<33x1xf32> to vector<33x1024xf32>
    %16 = arith.addf %13, %15 : vector<33x1024xf32>
    %c0_12 = arith.constant 0 : index
    %c0_13 = arith.constant 0 : index
    %17 = vector.load %arg3[%c0_12, %c0_13] : memref<1x1024xf32, #tpu.memory_space<vmem>>, vector<1x1024xf32>
    %18 = vector.broadcast %17 : vector<1x1024xf32> to vector<33x1024xf32>
    %19 = arith.mulf %16, %18 : vector<33x1024xf32>
    %20 = arith.truncf %19 : vector<33x1024xf32> to vector<33x1024xbf16>
    %21 = tpu.iota {dimensions = array<i32: 0>} : vector<64x1024xi32>
    %c0_14 = arith.constant 0 : index
    %c0_15 = arith.constant 0 : index
    %22 = vector.load %arg2[%c0_14, %c0_15] : memref<1x1024xi32, #tpu.memory_space<vmem>>, vector<1x1024xi32>
    %23 = vector.broadcast %22 : vector<1x1024xi32> to vector<64x1024xi32>
    %24 = arith.cmpi eq, %23, %21 : vector<64x1024xi32>
    %25 = arith.extui %24 : vector<64x1024xi1> to vector<64x1024xi32>
    %26 = arith.sitofp %25 : vector<64x1024xi32> to vector<64x1024xf32>
    %27 = arith.truncf %26 : vector<64x1024xf32> to vector<64x1024xbf16>
    %c0_16 = arith.constant 0 : index
    %c0_17 = arith.constant 0 : index
    %c0_18 = arith.constant 0 : index
    %28 = vector.load %arg9[%c0_16, %c0_17, %c0_18] : memref<1x33x64xf32, #tpu.memory_space<vmem>>, vector<1x33x64xf32>
    %29 = vector.shape_cast %28 : vector<1x33x64xf32> to vector<33x64xf32>
    %cst_19 = arith.constant dense<0.000000e+00> : vector<33x64xf32>
    %30 = tpu.matmul %20, %27, %cst_19 {dimension_numbers = #tpu.dot_dimension_numbers<[1], [1], [0], [0], [0, 0, 1, 0], [], []>} : vector<33x1024xbf16>, vector<64x1024xbf16>, vector<33x64xf32> -> vector<33x64xf32>
    %31 = arith.addf %29, %30 : vector<33x64xf32>
    %c0_20 = arith.constant 0 : index
    %c0_21 = arith.constant 0 : index
    %c0_22 = arith.constant 0 : index
    %32 = vector.load %arg9[%c0_20, %c0_21, %c0_22] : memref<1x33x64xf32, #tpu.memory_space<vmem>>, vector<1x33x64xf32>
    %33 = vector.shape_cast %32 : vector<1x33x64xf32> to vector<33x64xf32>
    %34 = vector.shape_cast %31 : vector<33x64xf32> to vector<1x33x64xf32>
    tpu.vector_store %arg9[%c0_20, %c0_21, %c0_22], %34 {strides = array<i32>} : memref<1x33x64xf32, #tpu.memory_space<vmem>>, vector<1x33x64xf32>,
    return
  }
  func.func @transform_0(%arg0: i32, %arg1: i32) -> (i32, i32) {
    %c2_i32 = arith.constant 2 : i32
    %0 = arith.muli %arg0, %c2_i32 : i32
    %1 = arith.addi %0, %arg1 : i32
    %c0_i32 = arith.constant 0 : i32
    %c0_i32_0 = arith.constant 0 : i32
    return %c0_i32, %1 : i32, i32
  }
  func.func @transform_1(%arg0: i32, %arg1: i32) -> (i32, i32) {
    %c2_i32 = arith.constant 2 : i32
    %0 = arith.muli %arg0, %c2_i32 : i32
    %1 = arith.addi %0, %arg1 : i32
    %c0_i32 = arith.constant 0 : i32
    %c0_i32_0 = arith.constant 0 : i32
    return %c0_i32, %1 : i32, i32
  }
  func.func @transform_2(%arg0: i32, %arg1: i32) -> (i32, i32) {
    %c2_i32 = arith.constant 2 : i32
    %0 = arith.muli %arg0, %c2_i32 : i32
    %1 = arith.addi %0, %arg1 : i32
    %c0_i32 = arith.constant 0 : i32
    %c0_i32_0 = arith.constant 0 : i32
    return %c0_i32, %1 : i32, i32
  }
  func.func @transform_3(%arg0: i32, %arg1: i32) -> (i32, i32) {
    %c0_i32 = arith.constant 0 : i32
    %c0_i32_0 = arith.constant 0 : i32
    %c0_i32_1 = arith.constant 0 : i32
    return %c0_i32, %c0_i32_0 : i32, i32
  }
  func.func @transform_4(%arg0: i32, %arg1: i32) -> (i32, i32) {
    %c0_i32 = arith.constant 0 : i32
    %c0_i32_0 = arith.constant 0 : i32
    %c0_i32_1 = arith.constant 0 : i32
    return %c0_i32, %c0_i32_0 : i32, i32
  }
  func.func @transform_5(%arg0: i32, %arg1: i32) -> (i32, i32) {
    %c0_i32 = arith.constant 0 : i32
    %c0_i32_0 = arith.constant 0 : i32
    %c0_i32_1 = arith.constant 0 : i32
    return %c0_i32, %c0_i32_0 : i32, i32
  }
  func.func @transform_6(%arg0: i32, %arg1: i32) -> (i32, i32) {
    %c0_i32 = arith.constant 0 : i32
    %c0_i32_0 = arith.constant 0 : i32
    %c0_i32_1 = arith.constant 0 : i32
    return %c0_i32, %c0_i32_0 : i32, i32
  }
  func.func @transform_7(%arg0: i32, %arg1: i32) -> (i32, i32, i32) {
    %c0_i32 = arith.constant 0 : i32
    %c0_i32_0 = arith.constant 0 : i32
    %c0_i32_1 = arith.constant 0 : i32
    return %arg0, %c0_i32, %c0_i32_0 : i32, i32, i32
  }
}

module attributes {stable_mosaic.version = 11 : i64} {
  func.func @_up_head_kernel(%arg0: i32, %arg1: memref<8x512xbf16, #tpu.memory_space<vmem>>, %arg2: memref<16x8xbf16, #tpu.memory_space<vmem>>, %arg3: memref<3x16x128xf32, #tpu.memory_space<vmem>>, %arg4: memref<4x3xf32, #tpu.memory_space<smem>>, %arg5: memref<4xf32, #tpu.memory_space<smem>>, %arg6: memref<4x16x128xf32, #tpu.memory_space<vmem>>) attributes {dimension_semantics = [#tpu.dimension_semantics<parallel>], iteration_bounds = array<i64: 1>, scalar_prefetch = 0 : i64, scratch_operands = 0 : i64, tpu.core_type = #tpu.core_type<tc>, window_params = [{pipeline_mode = #tpu.pipeline_mode<synchronous>, transform_indices = @transform_0, window_bounds = array<i64: 8, 512>}, {transform_indices = @transform_1, window_bounds = array<i64: 16, 8>}, {transform_indices = @transform_2, window_bounds = array<i64: 3, 16, 128>}, {transform_indices = @transform_3, window_bounds = array<i64: 4, 3>}, {transform_indices = @transform_4, window_bounds = array<i64: 4>}, {transform_indices = @transform_5, window_bounds = array<i64: 4, 16, 128>}]} {
    %c0 = arith.constant 0 : index
    %c0_0 = arith.constant 0 : index
    %0 = vector.load %arg2[%c0, %c0_0] : memref<16x8xbf16, #tpu.memory_space<vmem>>, vector<16x8xbf16>
    %c0_1 = arith.constant 0 : index
    %c0_2 = arith.constant 0 : index
    %1 = vector.load %arg1[%c0_1, %c0_2] : memref<8x512xbf16, #tpu.memory_space<vmem>>, vector<8x512xbf16>
    %cst = arith.constant dense<0.000000e+00> : vector<16x512xf32>
    %2 = tpu.matmul %0, %1, %cst {dimension_numbers = #tpu.dot_dimension_numbers<[1], [0], [0], [1], [0, 0, 1, 1], [], []>} : vector<16x8xbf16>, vector<8x512xbf16>, vector<16x512xf32> -> vector<16x512xf32>
    %c0_3 = arith.constant 0 : index
    %c0_4 = arith.constant 0 : index
    %c0_5 = arith.constant 0 : index
    %3 = vector.load %arg3[%c0_3, %c0_4, %c0_5] : memref<3x16x128xf32, #tpu.memory_space<vmem>>, vector<1x16x128xf32>
    %4 = vector.shape_cast %3 : vector<1x16x128xf32> to vector<16x128xf32>
    %c1 = arith.constant 1 : index
    %c0_6 = arith.constant 0 : index
    %c0_7 = arith.constant 0 : index
    %5 = vector.load %arg3[%c1, %c0_6, %c0_7] : memref<3x16x128xf32, #tpu.memory_space<vmem>>, vector<1x16x128xf32>
    %6 = vector.shape_cast %5 : vector<1x16x128xf32> to vector<16x128xf32>
    %c2 = arith.constant 2 : index
    %c0_8 = arith.constant 0 : index
    %c0_9 = arith.constant 0 : index
    %7 = vector.load %arg3[%c2, %c0_8, %c0_9] : memref<3x16x128xf32, #tpu.memory_space<vmem>>, vector<1x16x128xf32>
    %8 = vector.shape_cast %7 : vector<1x16x128xf32> to vector<16x128xf32>
    %9 = vector.extract_strided_slice %2 {offsets = [0, 0], sizes = [16, 128], strides = [1, 1]} : vector<16x512xf32> to vector<16x128xf32>
    %c0_10 = arith.constant 0 : index
    %c0_11 = arith.constant 0 : index
    %10 = memref.load %arg4[%c0_10, %c0_11] : memref<4x3xf32, #tpu.memory_space<smem>>
    %11 = vector.broadcast %10 : f32 to vector<16x128xf32>
    %12 = arith.mulf %4, %11 : vector<16x128xf32>
    %13 = arith.addf %9, %12 : vector<16x128xf32>
    %c0_12 = arith.constant 0 : index
    %c1_13 = arith.constant 1 : index
    %14 = memref.load %arg4[%c0_12, %c1_13] : memref<4x3xf32, #tpu.memory_space<smem>>
    %15 = vector.broadcast %14 : f32 to vector<16x128xf32>
    %16 = arith.mulf %6, %15 : vector<16x128xf32>
    %17 = arith.addf %13, %16 : vector<16x128xf32>
    %c0_14 = arith.constant 0 : index
    %c2_15 = arith.constant 2 : index
    %18 = memref.load %arg4[%c0_14, %c2_15] : memref<4x3xf32, #tpu.memory_space<smem>>
    %19 = vector.broadcast %18 : f32 to vector<16x128xf32>
    %20 = arith.mulf %8, %19 : vector<16x128xf32>
    %21 = arith.addf %17, %20 : vector<16x128xf32>
    %c0_16 = arith.constant 0 : index
    %22 = memref.load %arg5[%c0_16] : memref<4xf32, #tpu.memory_space<smem>>
    %23 = vector.broadcast %22 : f32 to vector<16x128xf32>
    %24 = arith.addf %21, %23 : vector<16x128xf32>
    %c0_17 = arith.constant 0 : index
    %c0_18 = arith.constant 0 : index
    %c0_19 = arith.constant 0 : index
    %25 = vector.load %arg6[%c0_17, %c0_18, %c0_19] : memref<4x16x128xf32, #tpu.memory_space<vmem>>, vector<1x16x128xf32>
    %26 = vector.shape_cast %25 : vector<1x16x128xf32> to vector<16x128xf32>
    %27 = vector.shape_cast %24 : vector<16x128xf32> to vector<1x16x128xf32>
    tpu.vector_store %arg6[%c0_17, %c0_18, %c0_19], %27 {strides = array<i32>} : memref<4x16x128xf32, #tpu.memory_space<vmem>>, vector<1x16x128xf32>,
    %28 = vector.extract_strided_slice %2 {offsets = [0, 128], sizes = [16, 128], strides = [1, 1]} : vector<16x512xf32> to vector<16x128xf32>
    %c1_20 = arith.constant 1 : index
    %c0_21 = arith.constant 0 : index
    %29 = memref.load %arg4[%c1_20, %c0_21] : memref<4x3xf32, #tpu.memory_space<smem>>
    %30 = vector.broadcast %29 : f32 to vector<16x128xf32>
    %31 = arith.mulf %4, %30 : vector<16x128xf32>
    %32 = arith.addf %28, %31 : vector<16x128xf32>
    %c1_22 = arith.constant 1 : index
    %c1_23 = arith.constant 1 : index
    %33 = memref.load %arg4[%c1_22, %c1_23] : memref<4x3xf32, #tpu.memory_space<smem>>
    %34 = vector.broadcast %33 : f32 to vector<16x128xf32>
    %35 = arith.mulf %6, %34 : vector<16x128xf32>
    %36 = arith.addf %32, %35 : vector<16x128xf32>
    %c1_24 = arith.constant 1 : index
    %c2_25 = arith.constant 2 : index
    %37 = memref.load %arg4[%c1_24, %c2_25] : memref<4x3xf32, #tpu.memory_space<smem>>
    %38 = vector.broadcast %37 : f32 to vector<16x128xf32>
    %39 = arith.mulf %8, %38 : vector<16x128xf32>
    %40 = arith.addf %36, %39 : vector<16x128xf32>
    %c1_26 = arith.constant 1 : index
    %41 = memref.load %arg5[%c1_26] : memref<4xf32, #tpu.memory_space<smem>>
    %42 = vector.broadcast %41 : f32 to vector<16x128xf32>
    %43 = arith.addf %40, %42 : vector<16x128xf32>
    %c1_27 = arith.constant 1 : index
    %c0_28 = arith.constant 0 : index
    %c0_29 = arith.constant 0 : index
    %44 = vector.load %arg6[%c1_27, %c0_28, %c0_29] : memref<4x16x128xf32, #tpu.memory_space<vmem>>, vector<1x16x128xf32>
    %45 = vector.shape_cast %44 : vector<1x16x128xf32> to vector<16x128xf32>
    %46 = vector.shape_cast %43 : vector<16x128xf32> to vector<1x16x128xf32>
    tpu.vector_store %arg6[%c1_27, %c0_28, %c0_29], %46 {strides = array<i32>} : memref<4x16x128xf32, #tpu.memory_space<vmem>>, vector<1x16x128xf32>,
    %47 = vector.extract_strided_slice %2 {offsets = [0, 256], sizes = [16, 128], strides = [1, 1]} : vector<16x512xf32> to vector<16x128xf32>
    %c2_30 = arith.constant 2 : index
    %c0_31 = arith.constant 0 : index
    %48 = memref.load %arg4[%c2_30, %c0_31] : memref<4x3xf32, #tpu.memory_space<smem>>
    %49 = vector.broadcast %48 : f32 to vector<16x128xf32>
    %50 = arith.mulf %4, %49 : vector<16x128xf32>
    %51 = arith.addf %47, %50 : vector<16x128xf32>
    %c2_32 = arith.constant 2 : index
    %c1_33 = arith.constant 1 : index
    %52 = memref.load %arg4[%c2_32, %c1_33] : memref<4x3xf32, #tpu.memory_space<smem>>
    %53 = vector.broadcast %52 : f32 to vector<16x128xf32>
    %54 = arith.mulf %6, %53 : vector<16x128xf32>
    %55 = arith.addf %51, %54 : vector<16x128xf32>
    %c2_34 = arith.constant 2 : index
    %c2_35 = arith.constant 2 : index
    %56 = memref.load %arg4[%c2_34, %c2_35] : memref<4x3xf32, #tpu.memory_space<smem>>
    %57 = vector.broadcast %56 : f32 to vector<16x128xf32>
    %58 = arith.mulf %8, %57 : vector<16x128xf32>
    %59 = arith.addf %55, %58 : vector<16x128xf32>
    %c2_36 = arith.constant 2 : index
    %60 = memref.load %arg5[%c2_36] : memref<4xf32, #tpu.memory_space<smem>>
    %61 = vector.broadcast %60 : f32 to vector<16x128xf32>
    %62 = arith.addf %59, %61 : vector<16x128xf32>
    %c2_37 = arith.constant 2 : index
    %c0_38 = arith.constant 0 : index
    %c0_39 = arith.constant 0 : index
    %63 = vector.load %arg6[%c2_37, %c0_38, %c0_39] : memref<4x16x128xf32, #tpu.memory_space<vmem>>, vector<1x16x128xf32>
    %64 = vector.shape_cast %63 : vector<1x16x128xf32> to vector<16x128xf32>
    %65 = vector.shape_cast %62 : vector<16x128xf32> to vector<1x16x128xf32>
    tpu.vector_store %arg6[%c2_37, %c0_38, %c0_39], %65 {strides = array<i32>} : memref<4x16x128xf32, #tpu.memory_space<vmem>>, vector<1x16x128xf32>,
    %66 = vector.extract_strided_slice %2 {offsets = [0, 384], sizes = [16, 128], strides = [1, 1]} : vector<16x512xf32> to vector<16x128xf32>
    %c3 = arith.constant 3 : index
    %c0_40 = arith.constant 0 : index
    %67 = memref.load %arg4[%c3, %c0_40] : memref<4x3xf32, #tpu.memory_space<smem>>
    %68 = vector.broadcast %67 : f32 to vector<16x128xf32>
    %69 = arith.mulf %4, %68 : vector<16x128xf32>
    %70 = arith.addf %66, %69 : vector<16x128xf32>
    %c3_41 = arith.constant 3 : index
    %c1_42 = arith.constant 1 : index
    %71 = memref.load %arg4[%c3_41, %c1_42] : memref<4x3xf32, #tpu.memory_space<smem>>
    %72 = vector.broadcast %71 : f32 to vector<16x128xf32>
    %73 = arith.mulf %6, %72 : vector<16x128xf32>
    %74 = arith.addf %70, %73 : vector<16x128xf32>
    %c3_43 = arith.constant 3 : index
    %c2_44 = arith.constant 2 : index
    %75 = memref.load %arg4[%c3_43, %c2_44] : memref<4x3xf32, #tpu.memory_space<smem>>
    %76 = vector.broadcast %75 : f32 to vector<16x128xf32>
    %77 = arith.mulf %8, %76 : vector<16x128xf32>
    %78 = arith.addf %74, %77 : vector<16x128xf32>
    %c3_45 = arith.constant 3 : index
    %79 = memref.load %arg5[%c3_45] : memref<4xf32, #tpu.memory_space<smem>>
    %80 = vector.broadcast %79 : f32 to vector<16x128xf32>
    %81 = arith.addf %78, %80 : vector<16x128xf32>
    %c3_46 = arith.constant 3 : index
    %c0_47 = arith.constant 0 : index
    %c0_48 = arith.constant 0 : index
    %82 = vector.load %arg6[%c3_46, %c0_47, %c0_48] : memref<4x16x128xf32, #tpu.memory_space<vmem>>, vector<1x16x128xf32>
    %83 = vector.shape_cast %82 : vector<1x16x128xf32> to vector<16x128xf32>
    %84 = vector.shape_cast %81 : vector<16x128xf32> to vector<1x16x128xf32>
    tpu.vector_store %arg6[%c3_46, %c0_47, %c0_48], %84 {strides = array<i32>} : memref<4x16x128xf32, #tpu.memory_space<vmem>>, vector<1x16x128xf32>,
    return
  }
  func.func @transform_0(%arg0: i32) -> (i32, i32) {
    %c0_i32 = arith.constant 0 : i32
    %c0_i32_0 = arith.constant 0 : i32
    %c0_i32_1 = arith.constant 0 : i32
    return %c0_i32, %c0_i32_0 : i32, i32
  }
  func.func @transform_1(%arg0: i32) -> (i32, i32) {
    %c0_i32 = arith.constant 0 : i32
    %c0_i32_0 = arith.constant 0 : i32
    return %arg0, %c0_i32 : i32, i32
  }
  func.func @transform_2(%arg0: i32) -> (i32, i32, i32) {
    %c0_i32 = arith.constant 0 : i32
    %c0_i32_0 = arith.constant 0 : i32
    %c0_i32_1 = arith.constant 0 : i32
    return %c0_i32, %arg0, %c0_i32_0 : i32, i32, i32
  }
  func.func @transform_3(%arg0: i32) -> (i32, i32) {
    %c0_i32 = arith.constant 0 : i32
    %c0_i32_0 = arith.constant 0 : i32
    %c0_i32_1 = arith.constant 0 : i32
    return %c0_i32, %c0_i32_0 : i32, i32
  }
  func.func @transform_4(%arg0: i32) -> i32 {
    %c0_i32 = arith.constant 0 : i32
    %c0_i32_0 = arith.constant 0 : i32
    return %c0_i32 : i32
  }
  func.func @transform_5(%arg0: i32) -> (i32, i32, i32) {
    %c0_i32 = arith.constant 0 : i32
    %c0_i32_0 = arith.constant 0 : i32
    %c0_i32_1 = arith.constant 0 : i32
    return %c0_i32, %arg0, %c0_i32_0 : i32, i32, i32
  }
}

</mosaic_0001>

<bundles_post_ra>
// kernel: _lambda_.3
= control target key start
LH: loop header
LB: loop body
LE: loop exit
PB: predicated region body
PF: predicated region fallthrough
CT: control target
= control target key end

     0   :  { %10 = vsyncpa [#allocation4], 0  ;;  %s513_s0 = inlined_call_operand.vmem [shape: bf16[8,512], index: 0, kind: input, shape index: {}]   ;;  %s514_s1 = inlined_call_operand.vmem [shape: bf16[16,8], index: 1, kind: input, shape index: {}]   ;;  %s515_s2 = inlined_call_operand.vmem [shape: f32[3,16,128], index: 2, kind: input, shape index: {}]   ;;  %s516_s3 = inlined_call_operand.vmem [shape: f32[4,3], index: 3, kind: input, shape index: {}]   ;;  %s517_s4 = inlined_call_operand.vmem [shape: f32[4], index: 4, kind: input, shape index: {}]   ;;  %s518_s5 = inlined_call_operand.hbm [shape: f32[4,16,128], index: 5, kind: output, shape index: {}]  }
   0x1   :  { %11 = vsyncpa [#allocation6], 0 }
   0x2   :  { %12 = vsyncpa [#allocation3], 0  ;;  %s25_s20 = sshll.u32 %s516_s3, 4  ;;  %s35_s23 = sshll.u32 %s517_s4, 4  ;;  %s26_s20 = int_to_ptr.vmem [resolvable:$true] %s25_s20  ;;  %s36_s23 = int_to_ptr.vmem [resolvable:$true] %s35_s23 }
   0x3   :  { %s332_s24 = scalar_lea.vmem %s26_s20, 64  ;;  %p337_p1 = scmp.lt.s32.totalorder %s26_s20, %s26_s20 }
   0x4   :  { %p333_p0 = scmp.ne.s32.totalorder %s26_s20, %s332_s24  ;;  %p338_p2 = scmp.lt.s32.totalorder %s332_s24, %s332_s24 }
   0x6   :  { %p339_p3 = por %p338_p2, %p337_p1 }
   0x8   :  { %p340_p4 = pnand %p339_p3, %p333_p0 }
   0xa   :  { %343 = shalt.err (!%p340_p4)
}
   0xb   :  { %s384_s25 = smov [#allocation2]   ;;  %s344_s26 = scalar_lea.vmem %s36_s23, 16 }
   0xc   :  { %28 = dma.vmem_to_smem %s26_s20, 64, %s384_s25, [#allocation4]  }
   0xd   :  { %p345_p5 = scmp.ne.s32.totalorder %s36_s23, %s344_s26  ;;  %p349_p6 = scmp.lt.s32.totalorder %s36_s23, %s36_s23 }
   0xe   :  { %p350_p7 = scmp.lt.s32.totalorder %s344_s26, %s344_s26 }
  0x10   :  { %p351_p8 = por %p350_p7, %p349_p6 }
  0x12   :  { %p352_p9 = pnand %p351_p8, %p345_p5 }
  0x14   :  { %355 = shalt.err (!%p352_p9)
}
  0x15   :  { %s385_s3 = smov [#allocation5]  }
  0x16   :  { %38 = dma.vmem_to_smem %s36_s23, 16, %s385_s3, [#allocation6]  }
  0x17   :  { %378 = dma.done.wait [#allocation4], 64  }
  0x18   :  { %379 = vsyncadd [#allocation4], 4294967232 }
  0x19   :  { %380 = dma.done.wait [#allocation6], 16  }
  0x1a   :  { %381 = vsyncadd [#allocation6], 4294967280 }
  0x1b   :  { %45 = sfence }
  0x1c   :  { %v49_v0 = vld [vmem:[%s513_s0] sm:$0xff]  ;;  %vm70_vm0 = vcmask 1043456   ;;  %v50_v1 = vld [vmem:[%s513_s0 + $0x8] sm:$0xff]  ;;  %v386_v6 = vmov 0   ;;  %vm66_vm1 = vcmask 64512   ;;  %s435_s0 = sld [smem:[#allocation2]] }
  0x1d   :  { %v296_v2 = vcombine.high %v49_v0, %v49_v0  ;;  %v298_v3 = vcombine.high %v50_v1, %v50_v1  ;;  %v295_v4 = vcombine.low %v49_v0, %v49_v0  ;;  %v297_v5 = vcombine.low %v50_v1, %v50_v1  ;;  %115 = vmatprep.mubr.bf16.mxu0 %v386_v6  ;;  %v331_v9 = vld [vmem:[%s514_s1] sm:$0xff]   ;;  %s437_s7 = sld [smem:[#allocation2 + $0x100]]  ;;  %s443_s10 = sld [smem:[#allocation2 + $0x1]]  ;;  %v303_v13 = vld [vmem:[%s515_s2 + $0x10] sm:$0xff]  ;;  %v170_v29 = vld [vmem:[%s515_s2 + $0x8] sm:$0xff] }
  0x1e   :  { %158 = vmatprep.mubr.bf16.mxu1 %v386_v6  ;;  %s439_s8 = sld [smem:[#allocation2 + $0x80]]  ;;  %s445_s11 = sld [smem:[#allocation2 + $0x101]]  ;;  %v169_v10 = vld [vmem:[%s515_s2] sm:$0xff]  ;;  %v304_v30 = vld [vmem:[%s515_s2 + $0x18] sm:$0xff]  ;;  %v306_v31 = vld [vmem:[%s515_s2 + $0x28] sm:$0xff] }
  0x1f   :  { %299 = vmatprep.subr.msk.bf16.mxu0 %vm70_vm0, %v296_v2  ;;  %301 = vmatprep.subr.msk.bf16.mxu1 %vm70_vm0, %v298_v3  ;;  %v72_v7 = vsel %vm70_vm0, %v295_v4, 0  ;;  %v78_v8 = vsel %vm70_vm0, %v297_v5, 0  ;;  %s441_s9 = sld [smem:[#allocation2 + $0x180]]  ;;  %s447_s1 = sld [smem:[#allocation2 + $0x81]]  ;;  %v305_v14 = vld [vmem:[%s515_s2 + $0x20] sm:$0xff] }
  0x20   :  { %84 = vmatpush1.bf16.msra.mxu0 %v72_v7  ;;  %127 = vmatpush1.bf16.msra.mxu1 %v78_v8  ;;  %s449_s12 = sld [smem:[#allocation2 + $0x181]]  ;;  %s451_s13 = sld [smem:[#allocation2 + $0x2]] }
  0x21   :  { %s453_s14 = sld [smem:[#allocation2 + $0x102]]  ;;  %s463_s19 = sld [smem:[#allocation5]] }
  0x22   :  { %s455_s15 = sld [smem:[#allocation2 + $0x82]]  ;;  %v178_v11 = vstv %s435_s0  ;;  %s475_s25 = sld [smem:[#allocation5 + $0x1]] }
  0x23   :  { %300 = vmatmul.mubr.msk.bf16.vlgmr.msra.gmra.mrb[0].mxu0 %vm66_vm1, %v331_v9  ;;  %302 = vmatmul.mubr.msk.bf16.vlgmr.msra.gmra.mrb[0].mxu1 %vm66_vm1, %v331_v9  ;;  %s457_s16 = sld [smem:[#allocation2 + $0x182]]  ;;  %v227_v12 = vstv %s437_s7  ;;  %v184_v17 = vstv %s443_s10  ;;  %s482_s26 = sld [smem:[#allocation5 + $0x3]]  ;;  %v179_v25 = vmul.f32 %v178_v11, %v169_v10  ;;  %v180_v40 = vmul.f32 %v178_v11, %v170_v29 }
  0x24   :  { %s466_s20 = sld [smem:[#allocation5 + $0x2]]  ;;  %v202_v15 = vstv %s439_s8  ;;  %v233_v18 = vstv %s445_s11  ;;  %v228_v26 = vmul.f32 %v227_v12, %v169_v10  ;;  %v185_v32 = vmul.f32 %v303_v13, %v184_v17  ;;  %s387_s2 = smov [#allocation7]  }
  0x25   :  { %v252_v16 = vstv %s441_s9  ;;  %v208_v19 = vstv %s447_s1  ;;  %v203_v27 = vmul.f32 %v202_v15, %v169_v10  ;;  %v234_v33 = vmul.f32 %v303_v13, %v233_v18  ;;  %s281_s6 = sshll.u32 %s387_s2, 4  ;;  %s282_s6 = int_to_ptr.vmem [resolvable:$true] %s281_s6 }
  0x26   :  { %v258_v20 = vstv %s449_s12  ;;  %v190_v21 = vstv %s451_s13  ;;  %v253_v28 = vmul.f32 %v252_v16, %v169_v10  ;;  %v209_v34 = vmul.f32 %v303_v13, %v208_v19  ;;  %s356_s0 = scalar_lea.vmem %s282_s6, 1024  ;;  %p361_p11 = scmp.lt.s32.totalorder %s282_s6, %s282_s6 }
  0x27   :  { %v239_v22 = vstv %s453_s14  ;;  %v259_v35 = vmul.f32 %v303_v13, %v258_v20  ;;  %v191_v36 = vmul.f32 %v305_v14, %v190_v21  ;;  %v186_v41 = vmul.f32 %v304_v30, %v184_v17  ;;  %p357_p10 = scmp.ne.s32.totalorder %s282_s6, %s356_s0  ;;  %p362_p12 = scmp.lt.s32.totalorder %s356_s0, %s356_s0 }
  0x28   :  { %v214_v23 = vstv %s455_s15  ;;  %v240_v37 = vmul.f32 %v305_v14, %v239_v22  ;;  %v192_v42 = vmul.f32 %v306_v31, %v190_v21  ;;  %v229_v43 = vmul.f32 %v227_v12, %v170_v29 }
  0x29   :  { %v264_v24 = vstv %s457_s16  ;;  %v215_v38 = vmul.f32 %v305_v14, %v214_v23  ;;  %v196_v44 = vstv %s463_s19  ;;  %v235_v46 = vmul.f32 %v304_v30, %v233_v18  ;;  %p363_p13 = por %p362_p12, %p361_p11 }
  0x2a   :  { %v265_v39 = vmul.f32 %v305_v14, %v264_v24  ;;  %v245_v45 = vstv %s466_s20  ;;  %v241_v47 = vmul.f32 %v306_v31, %v239_v22  ;;  %v220_v50 = vstv %s475_s25 }
  0x2b   :  { %v204_v51 = vmul.f32 %v202_v15, %v170_v29  ;;  %v210_v52 = vmul.f32 %v304_v30, %v208_v19  ;;  %v254_v53 = vmul.f32 %v252_v16, %v170_v29  ;;  %v270_v58 = vstv %s482_s26  ;;  %p364_p0 = pnand %p363_p13, %p357_p10 }
  0x2c   :  { %v216_v59 = vmul.f32 %v306_v31, %v214_v23  ;;  %v260_v0 = vmul.f32 %v304_v30, %v258_v20  ;;  %v266_v1 = vmul.f32 %v306_v31, %v264_v24 }
  0xf6   :  { %v117_v48 = vpop.f32.mrb[0].mxu0  ;;  %v160_v49 = vpop.f32.mrb[0].mxu1 }
  0xf7   :  { %v181_v54 = vadd.f32 %v179_v25, %v117_v48  ;;  %v230_v55 = vadd.f32 %v228_v26, %v160_v49  ;;  %v119_v56 = vpop.f32.mrb[1].mxu0  ;;  %v162_v57 = vpop.f32.mrb[1].mxu1 }
  0xf8   :  { %v205_v60 = vadd.f32 %v203_v27, %v119_v56  ;;  %v255_v61 = vadd.f32 %v253_v28, %v162_v57  ;;  %v121_v62 = vpop.f32.mrb[2].mxu0  ;;  %v164_v63 = vpop.f32.mrb[2].mxu1 }
  0xf9   :  { %v187_v2 = vadd.f32 %v185_v32, %v181_v54  ;;  %v236_v3 = vadd.f32 %v234_v33, %v230_v55  ;;  %v182_v4 = vadd.f32 %v180_v40, %v121_v62  ;;  %v231_v5 = vadd.f32 %v229_v43, %v164_v63  ;;  %v123_v6 = vpop.f32.mrb[3].mxu0  ;;  %v166_v7 = vpop.f32.mrb[3].mxu1 }
  0xfa   :  { %v211_v8 = vadd.f32 %v209_v34, %v205_v60  ;;  %v261_v9 = vadd.f32 %v259_v35, %v255_v61  ;;  %v206_v10 = vadd.f32 %v204_v51, %v123_v6  ;;  %v256_v11 = vadd.f32 %v254_v53, %v166_v7 }
  0xfb   :  { %v193_v12 = vadd.f32 %v191_v36, %v187_v2  ;;  %v242_v13 = vadd.f32 %v240_v37, %v236_v3  ;;  %v188_v14 = vadd.f32 %v186_v41, %v182_v4  ;;  %v237_v15 = vadd.f32 %v235_v46, %v231_v5 }
  0xfc   :  { %v217_v16 = vadd.f32 %v215_v38, %v211_v8  ;;  %v267_v17 = vadd.f32 %v265_v39, %v261_v9  ;;  %v212_v18 = vadd.f32 %v210_v52, %v206_v10  ;;  %v262_v19 = vadd.f32 %v260_v0, %v256_v11 }
  0xfd   :  { %v197_v20 = vadd.f32 %v196_v44, %v193_v12  ;;  %v246_v21 = vadd.f32 %v245_v45, %v242_v13  ;;  %v194_v22 = vadd.f32 %v192_v42, %v188_v14  ;;  %v243_v23 = vadd.f32 %v241_v47, %v237_v15 }
  0xfe   :  { %v221_v24 = vadd.f32 %v220_v50, %v217_v16  ;;  %v271_v25 = vadd.f32 %v270_v58, %v267_v17  ;;  %v218_v26 = vadd.f32 %v216_v59, %v212_v18  ;;  %v268_v27 = vadd.f32 %v266_v1, %v262_v19 }
  0xff   :  { %199 = vst [vmem:[#allocation7] sm:$0xff] %v197_v20  ;;  %249 = vst [vmem:[#allocation7 + $0x20] sm:$0xff] %v246_v21  ;;  %v198_v28 = vadd.f32 %v196_v44, %v194_v22  ;;  %v247_v29 = vadd.f32 %v245_v45, %v243_v23 }
 0x100   :  { %224 = vst [vmem:[#allocation7 + $0x10] sm:$0xff] %v221_v24  ;;  %274 = vst [vmem:[#allocation7 + $0x30] sm:$0xff] %v271_v25  ;;  %v222_v30 = vadd.f32 %v220_v50, %v218_v26  ;;  %v272_v31 = vadd.f32 %v270_v58, %v268_v27 }
 0x101   :  { %200 = vst [vmem:[#allocation7 + $0x8] sm:$0xff] %v198_v28  ;;  %250 = vst [vmem:[#allocation7 + $0x28] sm:$0xff] %v247_v29 }
 0x102   :  { %225 = vst [vmem:[#allocation7 + $0x18] sm:$0xff] %v222_v30  ;;  %275 = vst [vmem:[#allocation7 + $0x38] sm:$0xff] %v272_v31 }
 0x103   :  { %367 = shalt.err (!%p364_p0)
}
 0x104   :  { %s368_s9 = scalar_lea.hbm %s518_s5, 1024 }
 0x105   :  { %p369_p1 = scmp.ne.s32.totalorder %s518_s5, %s368_s9  ;;  %p372_p2 = scmp.lt.u32.totalorder %s368_s9, %s518_s5 }
 0x107   :  { %p374_p3 = pnand %p372_p2, %p369_p1 }
 0x109   :  { %377 = shalt.err (!%p374_p3)
}
 0x10a   :  { %s388_s13 = smov 128   ;;  %s389_s14 = smov 8  }
 0x10b   :  { %287 = dma.vmem_to_hbm [thread:$0]  %s282_s6, 1024, %s518_s5, [#allocation3], %s388_s13, %s388_s13, %s389_s14  }
 0x10c   :  { %382 = dma.done.wait [#allocation3], 1024  }
 0x10d   :  { %383 = vsyncadd [#allocation3], 4294966272 }
 0x10e   :  { %291 = vsyncpa [#allocation3], 1 }
 0x10f   :  { %292 = vsyncpa [#allocation4], 1 }
 0x110   :  { %293 = vsyncpa [#allocation6], 1 }

// kernel: _lambda_.2
= control target key start
LH: loop header
LB: loop body
LE: loop exit
PB: predicated region body
PF: predicated region fallthrough
CT: control target
= control target key end

     0   :  { %s2067_s24 = smov 0   ;;  %s2069_s25 = smov 0   ;;  %s2812_s0 = inlined_call_operand.vmem [shape: s32[1,4096], index: 0, kind: input, shape index: {}]   ;;  %s2813_s1 = inlined_call_operand.vmem [shape: f32[1,4096], index: 1, kind: input, shape index: {}]   ;;  %s2814_s2 = inlined_call_operand.vmem [shape: bf16[6,4096], index: 2, kind: input, shape index: {}]   ;;  %s2815_s3 = inlined_call_operand.vmem [shape: bf16[32,6], index: 3, kind: input, shape index: {}]   ;;  %s2816_s4 = inlined_call_operand.vmem [shape: f32[32,1], index: 4, kind: input, shape index: {}]   ;;  %s2817_s5 = inlined_call_operand.vmem [shape: bf16[33,32], index: 5, kind: input, shape index: {}]   ;;  %s2818_s6 = inlined_call_operand.vmem [shape: f32[33,1], index: 6, kind: input, shape index: {}]   ;;  %s2819_s7 = inlined_call_operand.vmem [shape: f32[2,33,64], index: 7, kind: output, shape index: {}]  }
   0x1   :  { %s2071_s26 = smov 0   ;;  %s2073_s27 = smov 0  }
   0x2   :  { %s2075_s28 = smov 0  }
   0x3 LB: > { %s26_s29 = sadd.s32 1, %s2014_s26  ;;  %s29_s30 = sadd.s32 1, %s2018_s27  ;;  %s2022_s28 = sphi %s2075_s28, %s17_s28   ;;  %s2018_s27 = sphi %s2073_s27, %s2849_s27   ;;  %s2014_s26 = sphi %s2071_s26, %s2848_s26   ;;  %s2010_s25 = sphi %s2069_s25, %s2847_s25   ;;  %s2006_s24 = sphi %s2067_s24, %s2846_s24  }
   0x4   : > { %p27_p0 = scmp.ge.s32.totalorder %s26_s29, 2  ;;  %p1748_p1 = scmp.ge.s32.totalorder %s2022_s28, 1 }
   0x5   : > { %p294_p2 = scmp.lt.s32.totalorder %s2022_s28, 5 }
   0x6   : > { %s2851_s29 = smov (%p27_p0, %s26_s29), 0  ;;  %s2853_s30 = smov (!%p27_p0, %s29_s30), %s2018_s27 }
   0x7   : > { %p295_p3 = pnand %p1748_p1, %p294_p2  ;;  %p31_p4 = scmp.ge.s32.totalorder %s2853_s30, 2 }
   0x8   : > { %s1749_s8 = sshll.u32 (!%p295_p3), %s2010_s25, 1  ;;  %p368_p5 = scmp.lt.s32.totalorder (!%p295_p3), %s2010_s25, 1 }
   0x9   : > { %s2855_s30 = smov (%p31_p4, %s2853_s30), 0  ;;  %298 = sbr.rel (%p295_p3) target bundleno = 757 (0x2f5), region = 48 }
   0xa   : > { %s341_s9 = sadd.s32 (!%p295_p3), %s2006_s24, %s1749_s8  ;;  %p1757_p7 = scmp.ne.s32.totalorder (!%p295_p3), %s2006_s24, 0 }
   0xb   : > { %s1750_s10 = sshll.u32 (!%p295_p3), %s341_s9, 3 }
   0xc   : > { %p343_p6 = scmp.lt.s32.totalorder (!%p295_p3), %s1750_s10, 31 }
  0x10   : > { %s2857_s25 = smov (!%p368_p5, %s2010_s25), 1  ;;  %s2859_s10 = smov (!%p343_p6, %s1750_s10), 31 }
  0x11   : > { %s1925_s11 = smul.u32 40, %s2857_s25  ;;  %s345_s14 = scalar_lea.vmem %s2812_s0, %s2859_s10  ;;  %vm378_vm0 = vcmask (!%p1757_p7), 523264   ;;  %vm383_vm1 = vcmask (!%p1757_p7), 516096   ;;  %v2024_v0 = vmov (!%p1757_p7), 0.0  }
  0x12   : > { %s354_s17 = scalar_lea.vmem %s2813_s1, %s2859_s10  ;;  %s1755_s18 = sshll.u32 %s2859_s10, 2 }
  0x13   : > { %s2114_s21 = scalar_lea.vmem %s2819_s7, %s1925_s11  ;;  %s364_s8 = scalar_lea.vmem %s2814_s2, %s1755_s18 }
  0x14   : > { %377 = sbr.rel (%p1757_p7) target bundleno = 27 (0x1b), region = 52  ;;  %379 = vst.msk [vmem:[%s2114_s21] sm:$0xff] (!%p1757_p7), %vm378_vm0, %v2024_v0  ;;  %380 = vst.msk [vmem:[%s2114_s21 + $0x8] sm:$0xff] (!%p1757_p7), %vm378_vm0, %v2024_v0 }
  0x15   : > { %381 = vst.msk [vmem:[%s2114_s21 + $0x10] sm:$0xff] (!%p1757_p7), %vm378_vm0, %v2024_v0  ;;  %382 = vst.msk [vmem:[%s2114_s21 + $0x18] sm:$0xff] (!%p1757_p7), %vm378_vm0, %v2024_v0 }
  0x16   : > { %384 = vst.msk [vmem:[%s2114_s21 + $0x20] sm:$0x1] (!%p1757_p7), %vm383_vm1, %v2024_v0 }
  0x1b PF: > { %v389_v1 = vld [vmem:[%s364_s8] sm:$0x77]  ;;  %vm454_vm2 = vcmask 1042432   ;;  %v390_v2 = vld [vmem:[%s364_s8 + $0x8] sm:$0x77]  ;;  %v2025_v7 = vmov 0   ;;  %v1043_v63 = vlaneseq }
  0x1c   : > { %v1761_v3 = vcombine.high %v389_v1, %v389_v1  ;;  %v1763_v4 = vcombine.high %v390_v2, %v390_v2  ;;  %v1760_v5 = vcombine.low %v389_v1, %v389_v1  ;;  %v1762_v6 = vcombine.low %v390_v2, %v390_v2  ;;  %511 = vmatprep.mubr.bf16.mxu0 %v2025_v7  ;;  %v1975_v8 = vld [vmem:[%s2815_s3] sm:$0xff]   ;;  %v391_v11 = vld [vmem:[%s364_s8 + $0x10] sm:$0x77]  ;;  %v392_v12 = vld [vmem:[%s364_s8 + $0x18] sm:$0x77] }
  0x1d   : > { %564 = vmatprep.mubr.bf16.mxu1 %v2025_v7  ;;  %1969 = vset.pattern.permute.xlu0 %v2025_v7  ;;  %vm447_vm3 = vcmask 48128   ;;  %v1765_v13 = vcombine.high %v391_v11, %v391_v11  ;;  %v1767_v14 = vcombine.high %v392_v12, %v392_v12  ;;  %v1764_v15 = vcombine.low %v391_v11, %v391_v11  ;;  %v393_v16 = vld [vmem:[%s2816_s4] sm:$0xff]  ;;  %v394_v19 = vld [vmem:[%s2816_s4 + $0x8] sm:$0xff]  ;;  %v395_v21 = vld [vmem:[%s2816_s4 + $0x10] sm:$0xff] }
  0x1e   : > { %1768 = vmatprep.subr.msk.bf16.mxu0 %vm454_vm2, %v1761_v3  ;;  %1771 = vmatprep.subr.msk.bf16.mxu1 %vm454_vm2, %v1763_v4  ;;  %v456_v9 = vsel %vm454_vm2, %v1760_v5, 0  ;;  %v462_v10 = vsel %vm454_vm2, %v1762_v6, 0  ;;  %v1766_v17 = vcombine.low %v392_v12, %v392_v12  ;;  %v1976_v22 = vld [vmem:[%s2815_s3 + $0x8] sm:$0xff]   ;;  %v744_v23 = vld [vmem:[%s2818_s6] sm:$0xff]  ;;  %v396_v24 = vld [vmem:[%s2816_s4 + $0x18] sm:$0xff]  ;;  %vm787_vm4 = vcmask 261120  }
  0x1f   : > { %480 = vmatpush1.bf16.msra.mxu0 %v456_v9  ;;  %533 = vmatpush1.bf16.msra.mxu1 %v462_v10  ;;  %v468_v18 = vsel %vm454_vm2, %v1764_v15, 0  ;;  %v746_v25 = vld [vmem:[%s2818_s6 + $0x10] sm:$0xff]  ;;  %v745_v26 = vld [vmem:[%s2818_s6 + $0x8] sm:$0xff]  ;;  %v748_v27 = vld [vmem:[%s2818_s6 + $0x20] sm:$0x1]  ;;  %v2210_v15 = vshrl.u32 %v1043_v63, 7 }
  0x20   : > { %399 = vperm.xlu0 %1969, %v393_v16   ;;  %1970 = vset.pattern.permute.xlu1 %v2025_v7  ;;  %v474_v20 = vsel %vm454_vm2, %v1766_v17, 0  ;;  %v747_v28 = vld [vmem:[%s2818_s6 + $0x18] sm:$0xff] }
  0x21   : > { %1774 = vmatprep.subr.msk.bf16.mxu0 %vm454_vm2, %v1765_v13  ;;  %1777 = vmatprep.subr.msk.bf16.mxu1 %vm454_vm2, %v1767_v14 }
  0x22   : > { %1769 = vmatmul.mubr.msk.bf16.vlgmr.msra.gmra.mrb[0].mxu0 %vm447_vm3, %v1975_v8  ;;  %1772 = vmatmul.mubr.msk.bf16.vlgmr.msra.gmra.mrb[0].mxu1 %vm447_vm3, %v1975_v8 }
  0x23   : > { %521 = vmatprep.mubr.bf16.mxu0 %v2025_v7  ;;  %574 = vmatprep.mubr.bf16.mxu1 %v2025_v7 }
  0x24   : > { %586 = vmatpush1.bf16.msra.mxu0 %v468_v18  ;;  %639 = vmatpush1.bf16.msra.mxu1 %v474_v20 }
  0x25   : > { %404 = vperm.xlu0 %1969, %v394_v19   ;;  %409 = vperm.xlu1 %1970, %v395_v21  }
  0x29   : > { %751 = vperm.xlu0 %1969, %v744_v23   ;;  %414 = vperm.xlu1 %1970, %v396_v24  }
  0x2a   : > { %1770 = vmatmul.mubr.msk.bf16.gmra.mrb[4].mxu0 %vm447_vm3, %v1976_v22  ;;  %1773 = vmatmul.mubr.msk.bf16.gmra.mrb[4].mxu1 %vm447_vm3, %v1976_v22 }
  0x2b   : > { %617 = vmatprep.mubr.bf16.mxu0 %v2025_v7  ;;  %670 = vmatprep.mubr.bf16.mxu1 %v2025_v7 }
  0x2d   : > { %761 = vperm.xlu0 %1969, %v746_v25   ;;  %756 = vperm.xlu1 %1970, %v745_v26  }
  0x31   : > { %771 = vperm.xlu0 %1969, %v748_v27   ;;  %766 = vperm.xlu1 %1970, %v747_v28  }
  0x32   : > { %1775 = vmatmul.mubr.msk.bf16.vlgmr.msra.gmra.mrb[8].mxu0 %vm447_vm3, %v1975_v8  ;;  %1778 = vmatmul.mubr.msk.bf16.vlgmr.msra.gmra.mrb[8].mxu1 %vm447_vm3, %v1975_v8 }
  0x33   : > { %627 = vmatprep.mubr.bf16.mxu0 %v2025_v7  ;;  %680 = vmatprep.mubr.bf16.mxu1 %v2025_v7 }
  0x3a   : > { %1776 = vmatmul.mubr.msk.bf16.gmra.mrb[12].mxu0 %vm447_vm3, %v1976_v22  ;;  %1779 = vmatmul.mubr.msk.bf16.gmra.mrb[12].mxu1 %vm447_vm3, %v1976_v22 }
  0x3b   : > { %829 = vmatprep.mubr.bf16.mxu0 %v2025_v7  ;;  %890 = vmatprep.mubr.bf16.mxu1 %v2025_v7 }
  0x9f   : > { %v2186_v29 = vpop.permute.xlu0 %399 }
  0xa4   : > { %v2188_v30 = vpop.permute.xlu0 %404  ;;  %v2190_v31 = vpop.permute.xlu1 %409 }
  0xa8   : > { %v2200_v56 = vpop.permute.xlu1 %414 }
  0xf5   : > { %v513_v32 = vpop.f32.mrb[0].mxu0  ;;  %v566_v33 = vpop.f32.mrb[0].mxu1 }
  0xf6   : > { %v514_v34 = vadd.f32 %v513_v32, %v2186_v29  ;;  %v567_v35 = vadd.f32 %v566_v33, %v2186_v29  ;;  %v515_v36 = vpop.f32.mrb[1].mxu0  ;;  %v568_v37 = vpop.f32.mrb[1].mxu1  ;;  %v1049_v33 = vsub.s32 1, %v2210_v15 }
  0xf7   : > { %v516_v38 = vadd.f32 %v515_v36, %v2186_v29  ;;  %v569_v39 = vadd.f32 %v568_v37, %v2186_v29  ;;  %v517_v40 = vpop.f32.mrb[2].mxu0  ;;  %v570_v41 = vpop.f32.mrb[2].mxu1 }
  0xf8   : > { %v693_v42 = vmax.f32 %v567_v35, 0.0  ;;  %v518_v43 = vadd.f32 %v517_v40, %v2188_v30  ;;  %v571_v44 = vadd.f32 %v570_v41, %v2188_v30  ;;  %v519_v45 = vpop.f32.mrb[3].mxu0  ;;  %v572_v46 = vpop.f32.mrb[3].mxu1  ;;  %v691_v50 = vmax.f32 %v514_v34, 0.0 }
  0xf9   : > { %v694_v47 = vmax.f32 %v569_v39, 0.0  ;;  %v520_v48 = vadd.f32 %v519_v45, %v2188_v30  ;;  %v573_v49 = vadd.f32 %v572_v46, %v2188_v30  ;;  %v692_v53 = vmax.f32 %v516_v38, 0.0  ;;  %v2220_v38 = vld [vmem:[%s345_s14] sm:$0xff] }
  0xfa   : > { %v699_v51 = vmax.f32 %v518_v43, 0.0  ;;  %v701_v52 = vmax.f32 %v571_v44, 0.0  ;;  %v2227_v43 = vld [vmem:[%s2817_s5] sm:$0xff]  }
  0xfb   : > { %v700_v54 = vmax.f32 %v520_v48, 0.0  ;;  %v702_v55 = vmax.f32 %v573_v49, 0.0  ;;  %v2236_v49 = vrot.slane %v2220_v38, %v1049_v33 }
  0xfc   : > { %v728_v57 = vpack.c.bf16 %v699_v51, %v691_v50  ;;  %v730_v58 = vpack.c.bf16 %v701_v52, %v693_v42  ;;  %v1057_v50 = vsub.s32 3, %v2210_v15 }
  0xfd   : > { %v729_v59 = vpack.c.bf16 %v700_v54, %v692_v53  ;;  %v731_v60 = vpack.c.bf16 %v702_v55, %v694_v47  ;;  %v523_v61 = vpop.f32.mrb[4].mxu0  ;;  %v576_v62 = vpop.f32.mrb[4].mxu1  ;;  %vm1190_vm5 = vcmp.eq.s32.totalorder %v2236_v49, %v2210_v15 }
  0xfe   : > { %v524_v0 = vadd.f32 %v523_v61, %v2190_v31  ;;  %v577_v1 = vadd.f32 %v576_v62, %v2190_v31  ;;  %v525_v2 = vpop.f32.mrb[5].mxu0  ;;  %v578_v3 = vpop.f32.mrb[5].mxu1  ;;  %v2246_v61 = vadd.s32 8, %v2210_v15 }
  0xff   : > { %v526_v4 = vadd.f32 %v525_v2, %v2190_v31  ;;  %v579_v5 = vadd.f32 %v578_v3, %v2190_v31  ;;  %v527_v6 = vpop.f32.mrb[6].mxu0  ;;  %v580_v8 = vpop.f32.mrb[6].mxu1  ;;  %797 = vmatprep.subr.bf16.mxu0 %v729_v59  ;;  %858 = vmatprep.subr.bf16.mxu1 %v731_v60  ;;  %v2251_v2 = vrot.slane %v2220_v38, %v1057_v50 }
 0x100   : > { %v528_v9 = vadd.f32 %v527_v6, %v2200_v56  ;;  %v581_v10 = vadd.f32 %v580_v8, %v2200_v56  ;;  %v529_v11 = vpop.f32.mrb[7].mxu0  ;;  %v582_v12 = vpop.f32.mrb[7].mxu1  ;;  %798 = vmatpush1.bf16.msra.mxu0 %v728_v57  ;;  %859 = vmatpush1.bf16.msra.mxu1 %v730_v58  ;;  %v707_v16 = vmax.f32 %v524_v0, 0.0  ;;  %v709_v17 = vmax.f32 %v577_v1, 0.0 }
 0x101   : > { %v530_v13 = vadd.f32 %v529_v11, %v2200_v56  ;;  %v583_v14 = vadd.f32 %v582_v12, %v2200_v56  ;;  %v708_v20 = vmax.f32 %v526_v4, 0.0  ;;  %v710_v21 = vmax.f32 %v579_v5, 0.0  ;;  %v2260_v12 = vld [vmem:[%s2817_s5 + $0x8] sm:$0xff]  }
 0x102   : > { %v715_v18 = vmax.f32 %v528_v9, 0.0  ;;  %v717_v19 = vmax.f32 %v581_v10, 0.0  ;;  %vm1198_vm6 = vcmp.eq.s32.totalorder %v2236_v49, %v2246_v61  ;;  %vm1192_vm7 = vcmp.eq.s32.totalorder %v2251_v2, %v2210_v15 }
 0x103   : > { %v716_v22 = vmax.f32 %v530_v13, 0.0  ;;  %v718_v23 = vmax.f32 %v583_v14, 0.0  ;;  %vm1200_vm8 = vcmp.eq.s32.totalorder %v2251_v2, %v2246_v61  ;;  %vm1859_vm9 = vmpackc.low %vm1198_vm6, %vm1190_vm5 }
 0x104   : > { %v736_v24 = vpack.c.bf16 %v715_v18, %v707_v16  ;;  %v738_v25 = vpack.c.bf16 %v717_v19, %v709_v17  ;;  %vm1875_vm10 = vmpackc.low %vm1200_vm8, %vm1192_vm7 }
 0x105   : > { %v737_v26 = vpack.c.bf16 %v716_v22, %v708_v20  ;;  %v739_v27 = vpack.c.bf16 %v718_v23, %v710_v21  ;;  %v619_v28 = vpop.f32.mrb[8].mxu0  ;;  %v672_v32 = vpop.f32.mrb[8].mxu1 }
 0x106   : > { %v620_v34 = vadd.f32 %v619_v28, %v2186_v29  ;;  %v673_v35 = vadd.f32 %v672_v32, %v2186_v29  ;;  %v621_v36 = vpop.f32.mrb[9].mxu0  ;;  %v674_v37 = vpop.f32.mrb[9].mxu1 }
 0x107   : > { %v622_v39 = vadd.f32 %v621_v36, %v2186_v29  ;;  %v675_v40 = vadd.f32 %v674_v37, %v2186_v29  ;;  %v623_v41 = vpop.f32.mrb[10].mxu0  ;;  %v676_v42 = vpop.f32.mrb[10].mxu1  ;;  %799 = vmatprep.subr.bf16.mxu0 %v737_v26  ;;  %860 = vmatprep.subr.bf16.mxu1 %v739_v27  ;;  %v2297_v36 = vld [vmem:[%s2817_s5 + $0x10] ss:$0 sps:$4 sm:$0x11]  }
 0x108   : > { %v624_v44 = vadd.f32 %v623_v41, %v2188_v30  ;;  %v677_v45 = vadd.f32 %v676_v42, %v2188_v30  ;;  %v625_v46 = vpop.f32.mrb[11].mxu0  ;;  %v678_v47 = vpop.f32.mrb[11].mxu1  ;;  %800 = vmatpush1.bf16.msra.mxu0 %v736_v24  ;;  %861 = vmatpush1.bf16.msra.mxu1 %v738_v25  ;;  %v695_v51 = vmax.f32 %v620_v34, 0.0  ;;  %v697_v52 = vmax.f32 %v673_v35, 0.0 }
 0x109   : > { %v626_v29 = vadd.f32 %v625_v46, %v2188_v30  ;;  %v679_v48 = vadd.f32 %v678_v47, %v2188_v30  ;;  %v696_v55 = vmax.f32 %v622_v39, 0.0  ;;  %v698_v57 = vmax.f32 %v675_v40, 0.0 }
 0x10a   : > { %v703_v53 = vmax.f32 %v624_v44, 0.0  ;;  %v705_v54 = vmax.f32 %v677_v45, 0.0  ;;  %v1045_v34 = vsub.s32 0, %v2210_v15  ;;  %v1053_v35 = vsub.s32 2, %v2210_v15 }
 0x10b   : > { %v704_v58 = vmax.f32 %v626_v29, 0.0  ;;  %v706_v59 = vmax.f32 %v679_v48, 0.0  ;;  %1783 = vmatmul.mubr.msk.bf16.vlgmr.msra.gmra.mrb[16].mxu0 %vm787_vm4, %v2227_v43  ;;  %1786 = vmatmul.mubr.msk.bf16.vlgmr.msra.gmra.mrb[16].mxu1 %vm787_vm4, %v2227_v43  ;;  %v2026_v37 = vmov 1.0|1.0   ;;  %v2316_v41 = vadd.s32 16, %v2210_v15 }
 0x10c   : > { %v732_v30 = vpack.c.bf16 %v703_v53, %v695_v51  ;;  %v734_v60 = vpack.c.bf16 %v705_v54, %v697_v52  ;;  %839 = vmatprep.mubr.bf16.mxu0 %v2025_v7  ;;  %900 = vmatprep.mubr.bf16.mxu1 %v2025_v7  ;;  %v2304_v39 = vrot.slane %v2220_v38, %v1045_v34  ;;  %v2319_v42 = vadd.s32 24, %v2210_v15 }
 0x10d   : > { %v733_v62 = vpack.c.bf16 %v704_v58, %v696_v55  ;;  %v735_v63 = vpack.c.bf16 %v706_v59, %v698_v57  ;;  %v629_v0 = vpop.f32.mrb[12].mxu0  ;;  %v682_v1 = vpop.f32.mrb[12].mxu1  ;;  %v2309_v40 = vrot.slane %v2220_v38, %v1053_v35  ;;  %vm1206_vm15 = vcmp.eq.s32.totalorder %v2236_v49, %v2316_v41  ;;  %v2472_v58 = vld [vmem:[%s354_s17] sm:$0xff] }
 0x10e   : > { %v630_v3 = vadd.f32 %v629_v0, %v2190_v31  ;;  %v683_v4 = vadd.f32 %v682_v1, %v2190_v31  ;;  %v631_v5 = vpop.f32.mrb[13].mxu0  ;;  %v684_v6 = vpop.f32.mrb[13].mxu1  ;;  %vm1189_vm11 = vcmp.eq.s32.totalorder %v2304_v39, %v2210_v15  ;;  %vm1197_vm12 = vcmp.eq.s32.totalorder %v2304_v39, %v2246_v61 }
 0x10f   : > { %v632_v8 = vadd.f32 %v631_v5, %v2190_v31  ;;  %v685_v9 = vadd.f32 %v684_v6, %v2190_v31  ;;  %v633_v10 = vpop.f32.mrb[14].mxu0  ;;  %v686_v11 = vpop.f32.mrb[14].mxu1  ;;  %919 = vmatprep.subr.bf16.mxu0 %v733_v62  ;;  %980 = vmatprep.subr.bf16.mxu1 %v735_v63  ;;  %vm1191_vm13 = vcmp.eq.s32.totalorder %v2309_v40, %v2210_v15  ;;  %vm1861_vm1 = vmpackc.low %vm1197_vm12, %vm1189_vm11  ;;  %v2344_v44 = vadd.s32 32, %v2210_v15 }
 0x110   : > { %v634_v13 = vadd.f32 %v633_v10, %v2200_v56  ;;  %v687_v14 = vadd.f32 %v686_v11, %v2200_v56  ;;  %v635_v16 = vpop.f32.mrb[15].mxu0  ;;  %v688_v17 = vpop.f32.mrb[15].mxu1  ;;  %920 = vmatpush1.bf16.msra.mxu0 %v732_v30  ;;  %981 = vmatpush1.bf16.msra.mxu1 %v734_v60  ;;  %v711_v19 = vmax.f32 %v630_v3, 0.0  ;;  %v713_v20 = vmax.f32 %v683_v4, 0.0 }
 0x111   : > { %v636_v31 = vadd.f32 %v635_v16, %v2200_v56  ;;  %v689_v18 = vadd.f32 %v688_v17, %v2200_v56  ;;  %v712_v23 = vmax.f32 %v632_v8, 0.0  ;;  %v714_v24 = vmax.f32 %v685_v9, 0.0  ;;  %v2474_v59 = vpop.permute.xlu0 %751  ;;  %v2476_v30 = vpop.permute.xlu1 %756 }
 0x112   : > { %v719_v21 = vmax.f32 %v634_v13, 0.0  ;;  %v721_v22 = vmax.f32 %v687_v14, 0.0  ;;  %vm1199_vm14 = vcmp.eq.s32.totalorder %v2309_v40, %v2246_v61  ;;  %vm1214_vm0 = vcmp.eq.s32.totalorder %v2236_v49, %v2319_v42 }
 0x113   : > { %v720_v25 = vmax.f32 %v636_v31, 0.0  ;;  %v722_v26 = vmax.f32 %v689_v18, 0.0  ;;  %1784 = vmatmul.mubr.msk.bf16.gmra.mrb[20].mxu0 %vm787_vm4, %v2260_v12  ;;  %1787 = vmatmul.mubr.msk.bf16.gmra.mrb[20].mxu1 %vm787_vm4, %v2260_v12  ;;  %vm1208_vm2 = vcmp.eq.s32.totalorder %v2251_v2, %v2316_v41  ;;  %vm1216_vm3 = vcmp.eq.s32.totalorder %v2251_v2, %v2319_v42  ;;  %vm1877_vm5 = vmpackc.low %vm1199_vm14, %vm1191_vm13 }
 0x114   : > { %v740_v56 = vpack.c.bf16 %v719_v21, %v711_v19  ;;  %v742_v27 = vpack.c.bf16 %v721_v22, %v713_v20  ;;  %849 = vmatprep.mubr.bf16.mxu0 %v2025_v7  ;;  %910 = vmatprep.mubr.bf16.mxu1 %v2025_v7  ;;  %vm1863_vm6 = vmpackc.low %vm1214_vm0, %vm1206_vm15  ;;  %v2347_v45 = vadd.s32 40, %v2210_v15  ;;  %vm1205_vm8 = vcmp.eq.s32.totalorder %v2304_v39, %v2316_v41 }
 0x115   : > { %v741_v28 = vpack.c.bf16 %v720_v25, %v712_v23  ;;  %v743_v32 = vpack.c.bf16 %v722_v26, %v714_v24  ;;  %vm1879_vm7 = vmpackc.low %vm1216_vm3, %vm1208_vm2  ;;  %vm1215_vm11 = vcmp.eq.s32.totalorder %v2309_v40, %v2319_v42  ;;  %vm1222_vm12 = vcmp.eq.s32.totalorder %v2236_v49, %v2344_v44  ;;  %v2522_v24 = vpop.permute.xlu0 %761  ;;  %v2524_v25 = vpop.permute.xlu1 %766 }
 0x116   : > { %vm1230_vm13 = vcmp.eq.s32.totalorder %v2236_v49, %v2347_v45  ;;  %vm1224_vm15 = vcmp.eq.s32.totalorder %v2251_v2, %v2344_v44  ;;  %vm1232_vm0 = vcmp.eq.s32.totalorder %v2251_v2, %v2347_v45  ;;  %v1065_v46 = vsub.s32 5, %v2210_v15 }
 0x117   : > { %921 = vmatprep.subr.bf16.mxu0 %v741_v28  ;;  %982 = vmatprep.subr.bf16.mxu1 %v743_v32  ;;  %vm1867_vm2 = vmpackc.low %vm1230_vm13, %vm1222_vm12  ;;  %v1073_v47 = vsub.s32 7, %v2210_v15  ;;  %v1069_v51 = vsub.s32 6, %v2210_v15  ;;  %v2482_v0 = vrot.slane %v2472_v58, %v1045_v34  ;;  %v2494_v6 = vrot.slane %v2472_v58, %v1049_v33 }
 0x118   : > { %922 = vmatpush1.bf16.msra.mxu0 %v740_v56  ;;  %983 = vmatpush1.bf16.msra.mxu1 %v742_v27  ;;  %vm1883_vm3 = vmpackc.low %vm1232_vm0, %vm1224_vm15  ;;  %v2414_v29 = vrot.slane %v2220_v38, %v1065_v46  ;;  %v2500_v9 = vrot.slane %v2472_v58, %v1057_v50 }
 0x119   : > { %1860 = vmatprep.subr.msk.bf16.mxu0 %vm1859_vm9, %v2026_v37  ;;  %1876 = vmatprep.subr.msk.bf16.mxu1 %vm1875_vm10, %v2026_v37  ;;  %vm1213_vm9 = vcmp.eq.s32.totalorder %v2304_v39, %v2319_v42  ;;  %vm1207_vm10 = vcmp.eq.s32.totalorder %v2309_v40, %v2316_v41  ;;  %v2419_v48 = vrot.slane %v2220_v38, %v1073_v47 }
 0x11a   : > { %vm1865_vm14 = vmpackc.low %vm1213_vm9, %vm1205_vm8  ;;  %vm1231_vm8 = vcmp.eq.s32.totalorder %v2309_v40, %v2347_v45  ;;  %v2441_v53 = vrot.slane %v2220_v38, %v1069_v51 }
 0x11b   : > { %1785 = vmatmul.mubr.msk.bf16.gmra.mrb[24].mxu0 %vm787_vm4, %v2297_v36  ;;  %1788 = vmatmul.mubr.msk.bf16.gmra.mrb[24].mxu1 %vm787_vm4, %v2297_v36 }
 0x11c   : > { %951 = vmatprep.mubr.bf16.mxu0 %v2025_v7  ;;  %1012 = vmatprep.mubr.bf16.mxu1 %v2025_v7 }
 0x123   : > { %1789 = vmatmul.mubr.msk.bf16.vlgmr.msra.gmra.mrb[28].mxu0 %vm787_vm4, %v2227_v43  ;;  %1792 = vmatmul.mubr.msk.bf16.vlgmr.msra.gmra.mrb[28].mxu1 %vm787_vm4, %v2227_v43  ;;  %v1155_v43 = vadd.s32 56, %v2210_v15 }
 0x124   : > { %961 = vmatprep.mubr.bf16.mxu0 %v2025_v7  ;;  %1022 = vmatprep.mubr.bf16.mxu1 %v2025_v7 }
 0x125   : > { %1862 = vmatpush1.bf16.xpose.msk.msra.mxu0 %vm1861_vm1, %v2026_v37  ;;  %1878 = vmatpush1.bf16.xpose.msk.msra.mxu1 %vm1877_vm5, %v2026_v37  ;;  %vm1881_vm1 = vmpackc.low %vm1215_vm11, %vm1207_vm10  ;;  %vm1221_vm5 = vcmp.eq.s32.totalorder %v2304_v39, %v2344_v44  ;;  %vm1246_vm12 = vcmp.eq.s32.totalorder %v2236_v49, %v1155_v43 }
 0x126   : > { %1864 = vmatprep.subr.msk.bf16.mxu0 %vm1863_vm6, %v2026_v37  ;;  %1880 = vmatprep.subr.msk.bf16.mxu1 %vm1879_vm7, %v2026_v37  ;;  %vm1229_vm6 = vcmp.eq.s32.totalorder %v2304_v39, %v2347_v45  ;;  %vm1223_vm7 = vcmp.eq.s32.totalorder %v2309_v40, %v2344_v44 }
 0x127   : > { %vm1869_vm9 = vmpackc.low %vm1229_vm6, %vm1221_vm5 }
 0x128   : > { %vm1885_vm10 = vmpackc.low %vm1231_vm8, %vm1223_vm7  ;;  %vm1194_vm7 = vcmp.eq.s32.totalorder %v2414_v29, %v2210_v15  ;;  %vm1202_vm8 = vcmp.eq.s32.totalorder %v2414_v29, %v2246_v61 }
 0x12b   : > { %1790 = vmatmul.mubr.msk.bf16.gmra.mrb[32].mxu0 %vm787_vm4, %v2260_v12  ;;  %1793 = vmatmul.mubr.msk.bf16.gmra.mrb[32].mxu1 %vm787_vm4, %v2260_v12 }
 0x12c   : > { %971 = vmatprep.mubr.bf16.mxu0 %v2025_v7  ;;  %1032 = vmatprep.mubr.bf16.mxu1 %v2025_v7  ;;  %v1154_v7 = vadd.s32 48, %v2210_v15 }
 0x12d   : > { %1866 = vmatpush1.bf16.xpose.msk.msra.mxu0 %vm1865_vm14, %v2026_v37  ;;  %1882 = vmatpush1.bf16.xpose.msk.msra.mxu1 %vm1881_vm1, %v2026_v37  ;;  %vm1248_vm14 = vcmp.eq.s32.totalorder %v2251_v2, %v1155_v43 }
 0x12e   : > { %1868 = vmatprep.subr.msk.bf16.mxu0 %vm1867_vm2, %v2026_v37  ;;  %1884 = vmatprep.subr.msk.bf16.mxu1 %vm1883_vm3, %v2026_v37  ;;  %vm1238_vm11 = vcmp.eq.s32.totalorder %v2236_v49, %v1154_v7  ;;  %vm1240_vm13 = vcmp.eq.s32.totalorder %v2251_v2, %v1154_v7  ;;  %vm1237_vm0 = vcmp.eq.s32.totalorder %v2304_v39, %v1154_v7  ;;  %v1061_v49 = vsub.s32 4, %v2210_v15 }
 0x12f   : > { %vm1871_vm15 = vmpackc.low %vm1246_vm12, %vm1238_vm11  ;;  %vm1239_vm2 = vcmp.eq.s32.totalorder %v2309_v40, %v1154_v7  ;;  %vm1247_vm3 = vcmp.eq.s32.totalorder %v2309_v40, %v1155_v43  ;;  %v2488_v2 = vrot.slane %v2472_v58, %v1053_v35 }
 0x130   : > { %vm1887_vm1 = vmpackc.low %vm1248_vm14, %vm1240_vm13  ;;  %v2436_v52 = vrot.slane %v2220_v38, %v1061_v49  ;;  %vm1242_vm13 = vcmp.eq.s32.totalorder %v2414_v29, %v1154_v7  ;;  %vm1250_vm14 = vcmp.eq.s32.totalorder %v2414_v29, %v1155_v43 }
 0x131   : > { %vm1889_vm6 = vmpackc.low %vm1247_vm3, %vm1239_vm2  ;;  %vm1243_vm3 = vcmp.eq.s32.totalorder %v2441_v53, %v1154_v7 }
 0x132   : > { %vm1891_vm11 = vmpackc.low %vm1202_vm8, %vm1194_vm7  ;;  %vm1249_vm2 = vcmp.eq.s32.totalorder %v2436_v52, %v1155_v43 }
 0x133   : > { %1791 = vmatmul.mubr.msk.bf16.gmra.mrb[36].mxu0 %vm787_vm4, %v2297_v36  ;;  %1794 = vmatmul.mubr.msk.bf16.gmra.mrb[36].mxu1 %vm787_vm4, %v2297_v36  ;;  %vm1245_vm4 = vcmp.eq.s32.totalorder %v2304_v39, %v1155_v43 }
 0x134   : > { %vm1873_vm5 = vmpackc.low %vm1245_vm4, %vm1237_vm0  ;;  %vm1252_vm0 = vcmp.eq.s32.totalorder %v2419_v48, %v1155_v43 }
 0x135   : > { %1870 = vmatpush1.bf16.xpose.msk.msra.mxu0 %vm1869_vm9, %v2026_v37  ;;  %1886 = vmatpush1.bf16.xpose.msk.msra.mxu1 %vm1885_vm10, %v2026_v37  ;;  %vm1196_vm9 = vcmp.eq.s32.totalorder %v2419_v48, %v2210_v15  ;;  %vm1204_vm10 = vcmp.eq.s32.totalorder %v2419_v48, %v2246_v61  ;;  %vm2447_vm4 = vmpackc.low %vm1250_vm14, %vm1242_vm13  ;;  %vm1210_vm13 = vcmp.eq.s32.totalorder %v2414_v29, %v2316_v41 }
 0x136   : > { %1872 = vmatprep.subr.msk.bf16.mxu0 %vm1871_vm15, %v2026_v37  ;;  %1888 = vmatprep.subr.msk.bf16.mxu1 %vm1887_vm1, %v2026_v37  ;;  %vm1907_vm12 = vmpackc.low %vm1204_vm10, %vm1196_vm9  ;;  %vm1244_vm15 = vcmp.eq.s32.totalorder %v2419_v48, %v1154_v7  ;;  %vm1241_vm1 = vcmp.eq.s32.totalorder %v2436_v52, %v1154_v7  ;;  %vm1193_vm9 = vcmp.eq.s32.totalorder %v2436_v52, %v2210_v15 }
 0x137   : > { %vm2459_vm7 = vmpackc.low %vm1249_vm2, %vm1241_vm1  ;;  %vm1201_vm10 = vcmp.eq.s32.totalorder %v2436_v52, %v2246_v61  ;;  %vm1218_vm14 = vcmp.eq.s32.totalorder %v2414_v29, %v2319_v42  ;;  %vm1220_vm1 = vcmp.eq.s32.totalorder %v2419_v48, %v2319_v42 }
 0x13d   : > { %1874 = vmatpush1.bf16.xpose.msk.msra.mxu0 %vm1873_vm5, %v2026_v37  ;;  %1890 = vmatpush1.bf16.xpose.msk.msra.mxu1 %vm1889_vm6, %v2026_v37  ;;  %vm1251_vm5 = vcmp.eq.s32.totalorder %v2441_v53, %v1155_v43  ;;  %vm2455_vm6 = vmpackc.low %vm1252_vm0, %vm1244_vm15  ;;  %vm1212_vm0 = vcmp.eq.s32.totalorder %v2419_v48, %v2316_v41 }
 0x13e   : > { %1892 = vmatprep.subr.msk.bf16.mxu0 %vm1891_vm11, %v2026_v37  ;;  %1908 = vmatprep.subr.msk.bf16.mxu1 %vm1907_vm12, %v2026_v37  ;;  %vm2463_vm8 = vmpackc.low %vm1251_vm5, %vm1243_vm3  ;;  %vm1195_vm11 = vcmp.eq.s32.totalorder %v2441_v53, %v2210_v15  ;;  %vm1203_vm12 = vcmp.eq.s32.totalorder %v2441_v53, %v2246_v61  ;;  %vm1209_vm3 = vcmp.eq.s32.totalorder %v2436_v52, %v2316_v41 }
 0x13f   : > { %vm2536_vm15 = vmpackc.low %vm1201_vm10, %vm1193_vm9  ;;  %vm1217_vm9 = vcmp.eq.s32.totalorder %v2436_v52, %v2319_v42  ;;  %v2690_v61 = vrot.slane %v2472_v58, %v1065_v46 }
 0x140   : > { %vm2552_vm2 = vmpackc.low %vm1203_vm12, %vm1195_vm11  ;;  %vm1211_vm11 = vcmp.eq.s32.totalorder %v2441_v53, %v2316_v41  ;;  %vm1219_vm12 = vcmp.eq.s32.totalorder %v2441_v53, %v2319_v42 }
 0x141   : > { %vm2566_vm5 = vmpackc.low %vm1218_vm14, %vm1210_vm13  ;;  %vm1226_vm13 = vcmp.eq.s32.totalorder %v2414_v29, %v2344_v44  ;;  %vm1234_vm14 = vcmp.eq.s32.totalorder %v2414_v29, %v2347_v45 }
 0x142   : > { %vm2580_vm10 = vmpackc.low %vm1220_vm1, %vm1212_vm0  ;;  %vm1228_vm0 = vcmp.eq.s32.totalorder %v2419_v48, %v2344_v44  ;;  %vm1236_vm1 = vcmp.eq.s32.totalorder %v2419_v48, %v2347_v45 }
 0x1de   : > { %v831_v60 = vpop.f32.mrb[16].mxu0  ;;  %v892_v62 = vpop.f32.mrb[16].mxu1 }
 0x1df   : > { %v832_v63 = vadd.f32 %v831_v60, %v2474_v59  ;;  %v893_v1 = vadd.f32 %v892_v62, %v2474_v59  ;;  %v833_v3 = vpop.f32.mrb[17].mxu0  ;;  %v894_v4 = vpop.f32.mrb[17].mxu1 }
 0x1e0   : > { %v834_v5 = vadd.f32 %v833_v3, %v2474_v59  ;;  %v895_v8 = vadd.f32 %v894_v4, %v2474_v59  ;;  %v835_v10 = vpop.f32.mrb[18].mxu0  ;;  %v896_v11 = vpop.f32.mrb[18].mxu1 }
 0x1e1   : > { %v836_v12 = vadd.f32 %v835_v10, %v2476_v30  ;;  %v897_v13 = vadd.f32 %v896_v11, %v2476_v30  ;;  %v837_v14 = vpop.f32.mrb[19].mxu0  ;;  %v898_v16 = vpop.f32.mrb[19].mxu1  ;;  %v1083_v50 = vmul.f32 %v2482_v0, %v832_v63  ;;  %v1085_v31 = vmul.f32 %v2488_v2, %v893_v1 }
 0x1e2   : > { %v838_v33 = vadd.f32 %v837_v14, %v2476_v30  ;;  %v899_v17 = vadd.f32 %v898_v16, %v2476_v30  ;;  %v1084_v20 = vmul.f32 %v2494_v6, %v834_v5  ;;  %v1086_v21 = vmul.f32 %v2500_v9, %v895_v8 }
 0x1e3   : > { %v1091_v18 = vmul.f32 %v2482_v0, %v836_v12  ;;  %v1093_v19 = vmul.f32 %v2488_v2, %v897_v13 }
 0x1e4   : > { %v1092_v22 = vmul.f32 %v2494_v6, %v838_v33  ;;  %v1094_v23 = vmul.f32 %v2500_v9, %v899_v17 }
 0x1e5   : > { %v1123_v26 = vpack.c.bf16 %v1091_v18, %v1083_v50  ;;  %v1125_v56 = vpack.c.bf16 %v1093_v19, %v1085_v31  ;;  %v2610_v19 = vpop.permute.xlu0 %771 }
 0x1e6   : > { %v841_v27 = vpop.f32.mrb[20].mxu0  ;;  %v902_v28 = vpop.f32.mrb[20].mxu1  ;;  %v1124_v32 = vpack.c.bf16 %v1092_v22, %v1084_v20  ;;  %v1126_v34 = vpack.c.bf16 %v1094_v23, %v1086_v21 }
 0x1e7   : > { %v842_v36 = vadd.f32 %v841_v27, %v2522_v24  ;;  %v903_v39 = vadd.f32 %v902_v28, %v2522_v24  ;;  %v843_v40 = vpop.f32.mrb[21].mxu0  ;;  %v904_v7 = vpop.f32.mrb[21].mxu1 }
 0x1e8   : > { %v844_v60 = vadd.f32 %v843_v40, %v2522_v24  ;;  %v905_v62 = vadd.f32 %v904_v7, %v2522_v24  ;;  %v845_v63 = vpop.f32.mrb[22].mxu0  ;;  %v906_v1 = vpop.f32.mrb[22].mxu1  ;;  %1450 = vmatprep.mubr.bf16.mxu0 %v1124_v32  ;;  %1506 = vmatprep.mubr.bf16.mxu1 %v1126_v34 }
 0x1e9   : > { %v846_v3 = vadd.f32 %v845_v63, %v2524_v25  ;;  %v907_v4 = vadd.f32 %v906_v1, %v2524_v25  ;;  %v847_v5 = vpop.f32.mrb[23].mxu0  ;;  %v908_v8 = vpop.f32.mrb[23].mxu1  ;;  %1451 = vmatmul.mubr.bf16.vlgmr.msra.gmra.mrb[40].mxu0 %v1123_v26  ;;  %v1099_v11 = vmul.f32 %v2482_v0, %v842_v36  ;;  %v1101_v12 = vmul.f32 %v2488_v2, %v903_v39 }
 0x1ea   : > { %v848_v13 = vadd.f32 %v847_v5, %v2524_v25  ;;  %v909_v14 = vadd.f32 %v908_v8, %v2524_v25  ;;  %1507 = vmatmul.mubr.bf16.vlgmr.msra.gmra.mrb[40].mxu1 %v1125_v56  ;;  %v1100_v16 = vmul.f32 %v2494_v6, %v844_v60  ;;  %1894 = vmatpush1.bf16.xpose.msk.msra.mxu0 %vm2536_vm15, %v2026_v37  ;;  %vm2622_vm15 = vmpackc.low %vm1217_vm9, %vm1209_vm3 }
 0x1eb   : > { %v1107_v33 = vmul.f32 %v2482_v0, %v846_v3  ;;  %v1109_v17 = vmul.f32 %v2488_v2, %v907_v4  ;;  %1910 = vmatpush1.bf16.xpose.msk.msra.mxu1 %vm2552_vm2, %v2026_v37  ;;  %v1102_v50 = vmul.f32 %v2500_v9, %v905_v62  ;;  %1896 = vmatprep.subr.msk.bf16.mxu0 %vm2566_vm5, %v2026_v37  ;;  %vm2637_vm2 = vmpackc.low %vm1219_vm12, %vm1211_vm11 }
 0x1ec   : > { %v1108_v31 = vmul.f32 %v2494_v6, %v848_v13  ;;  %v1110_v18 = vmul.f32 %v2500_v9, %v909_v14  ;;  %1912 = vmatprep.subr.msk.bf16.mxu1 %vm2580_vm10, %v2026_v37  ;;  %vm2650_vm3 = vmpackc.low %vm1234_vm14, %vm1226_vm13  ;;  %vm1225_vm9 = vcmp.eq.s32.totalorder %v2436_v52, %v2344_v44  ;;  %vm1233_vm10 = vcmp.eq.s32.totalorder %v2436_v52, %v2347_v45 }
 0x1ed   : > { %v1131_v20 = vpack.c.bf16 %v1107_v33, %v1099_v11  ;;  %v1133_v21 = vpack.c.bf16 %v1109_v17, %v1101_v12  ;;  %vm1915_vm5 = vmpackc.low %vm1236_vm1, %vm1228_vm0  ;;  %vm1227_vm11 = vcmp.eq.s32.totalorder %v2441_v53, %v2344_v44  ;;  %vm1235_vm12 = vcmp.eq.s32.totalorder %v2441_v53, %v2347_v45 }
 0x1ee   : > { %v851_v22 = vpop.f32.mrb[24].mxu0  ;;  %v912_v23 = vpop.f32.mrb[24].mxu1  ;;  %v1132_v26 = vpack.c.bf16 %v1108_v31, %v1100_v16  ;;  %v1134_v56 = vpack.c.bf16 %v1110_v18, %v1102_v50  ;;  %v2702_v8 = vrot.slane %v2472_v58, %v1069_v51  ;;  %vm2710_vm13 = vmpackc.low %vm1233_vm10, %vm1225_vm9 }
 0x1ef   : > { %v852_v28 = vadd.f32 %v851_v22, %v2610_v19  ;;  %v853_v32 = vpop.f32.mrb[25].mxu0  ;;  %v914_v34 = vpop.f32.mrb[25].mxu1  ;;  %v913_v36 = vadd.f32 %v912_v23, %v2610_v19  ;;  %vm2722_vm14 = vmpackc.low %vm1235_vm12, %vm1227_vm11 }
 0x1f0   : > { %v854_v39 = vadd.f32 %v853_v32, %v2610_v19  ;;  %v915_v40 = vadd.f32 %v914_v34, %v2610_v19  ;;  %1458 = vmatprep.mubr.bf16.mxu0 %v1132_v26  ;;  %1514 = vmatprep.mubr.bf16.mxu1 %v1134_v56  ;;  %v855_v7 = vpop.f32.mrb[26].mxu0  ;;  %v916_v43 = vpop.f32.mrb[26].mxu1 }
 0x1f1   : > { %1459 = vmatmul.mubr.bf16.gmra.mrb[44].mxu0 %v1131_v20  ;;  %v856_v42 = vpop.f32.mrb[27].mxu0  ;;  %v917_v60 = vpop.f32.mrb[27].mxu1  ;;  %v1115_v29 = vmul.f32 %v2482_v0, %v852_v28  ;;  %v1117_v48 = vmul.f32 %v2488_v2, %v913_v36  ;;  %v2681_v0 = vrot.slane %v2472_v58, %v1061_v49  ;;  %v2695_v49 = vrot.slane %v2472_v58, %v1073_v47 }
 0x1f2   : > { %v1116_v62 = vmul.f32 %v2494_v6, %v854_v39  ;;  %v1118_v63 = vmul.f32 %v2500_v9, %v915_v40  ;;  %1515 = vmatmul.mubr.bf16.gmra.mrb[44].mxu1 %v1133_v21  ;;  %1898 = vmatpush1.bf16.xpose.msk.msra.mxu0 %vm2622_vm15, %v2026_v37 }
 0x1f3   : > { %1914 = vmatpush1.bf16.xpose.msk.msra.mxu1 %vm2637_vm2, %v2026_v37  ;;  %1900 = vmatprep.subr.msk.bf16.mxu0 %vm2650_vm3, %v2026_v37  ;;  %v1139_v3 = vpack.c.bf16 %v1115_v29, %v1115_v29  ;;  %v1141_v47 = vpack.c.bf16 %v1117_v48, %v1117_v48 }
 0x1f4   : > { %v1140_v6 = vpack.c.bf16 %v1116_v62, %v1116_v62  ;;  %v1142_v9 = vpack.c.bf16 %v1118_v63, %v1118_v63  ;;  %1916 = vmatprep.subr.msk.bf16.mxu1 %vm1915_vm5, %v2026_v37 }
 0x1f6   : > { %v953_v2 = vpop.f32.mrb[28].mxu0  ;;  %v1014_v1 = vpop.f32.mrb[28].mxu1  ;;  %1466 = vmatprep.mubr.bf16.mxu0 %v1140_v6  ;;  %1522 = vmatprep.mubr.bf16.mxu1 %v1142_v9 }
 0x1f7   : > { %v954_v4 = vadd.f32 %v953_v2, %v2474_v59  ;;  %v1015_v5 = vadd.f32 %v1014_v1, %v2474_v59  ;;  %v955_v10 = vpop.f32.mrb[29].mxu0  ;;  %v1016_v11 = vpop.f32.mrb[29].mxu1 }
 0x1f8   : > { %v956_v12 = vadd.f32 %v955_v10, %v2474_v59  ;;  %v1017_v15 = vadd.f32 %v1016_v11, %v2474_v59  ;;  %v957_v13 = vpop.f32.mrb[30].mxu0  ;;  %v1018_v51 = vpop.f32.mrb[30].mxu1 }
 0x1f9   : > { %v2727_v52 = vmul.f32 %v2681_v0, %v954_v4  ;;  %v958_v14 = vadd.f32 %v957_v13, %v2476_v30  ;;  %v1019_v16 = vadd.f32 %v1018_v51, %v2476_v30  ;;  %v959_v59 = vpop.f32.mrb[31].mxu0  ;;  %v1020_v33 = vpop.f32.mrb[31].mxu1  ;;  %1467 = vmatmul.mubr.bf16.gmra.mrb[48].mxu0 %v1139_v3  ;;  %v1089_v50 = vmul.f32 %v2702_v8, %v1015_v5 }
 0x1fa   : > { %v1088_v17 = vmul.f32 %v2690_v61, %v956_v12  ;;  %v1090_v44 = vmul.f32 %v2695_v49, %v1017_v15  ;;  %v960_v45 = vadd.f32 %v959_v59, %v2476_v30  ;;  %v1021_v53 = vadd.f32 %v1020_v33, %v2476_v30  ;;  %1523 = vmatmul.mubr.bf16.gmra.mrb[48].mxu1 %v1141_v47 }
 0x1fb   : > { %v1095_v31 = vmul.f32 %v2681_v0, %v958_v14  ;;  %v1097_v18 = vmul.f32 %v2702_v8, %v1019_v16  ;;  %1902 = vmatpush1.bf16.xpose.msk.msra.mxu0 %vm2710_vm13, %v2026_v37  ;;  %1918 = vmatpush1.bf16.xpose.msk.msra.mxu1 %vm2722_vm14, %v2026_v37 }
 0x1fc   : > { %v1096_v20 = vmul.f32 %v2690_v61, %v960_v45  ;;  %v1098_v21 = vmul.f32 %v2695_v49, %v1021_v53  ;;  %1904 = vmatprep.subr.msk.bf16.mxu0 %vm2447_vm4, %v2026_v37  ;;  %1920 = vmatprep.subr.msk.bf16.mxu1 %vm2455_vm6, %v2026_v37  ;;  %vm1647_vm4 = vcmask 523264   ;;  %vm1652_vm6 = vcmask 516096  }
 0x1fd   : > { %v1127_v30 = vpack.c.bf16 %v1095_v31, %v2727_v52  ;;  %v1129_v22 = vpack.c.bf16 %v1097_v18, %v1089_v50 }
 0x1fe   : > { %v963_v23 = vpop.f32.mrb[32].mxu0  ;;  %v1024_v26 = vpop.f32.mrb[32].mxu1  ;;  %v1128_v56 = vpack.c.bf16 %v1096_v20, %v1088_v17  ;;  %v1130_v27 = vpack.c.bf16 %v1098_v21, %v1090_v44 }
 0x1ff   : > { %v964_v28 = vadd.f32 %v963_v23, %v2522_v24  ;;  %v1025_v32 = vadd.f32 %v1024_v26, %v2522_v24  ;;  %v965_v34 = vpop.f32.mrb[33].mxu0  ;;  %v1026_v35 = vpop.f32.mrb[33].mxu1 }
 0x200   : > { %v966_v54 = vadd.f32 %v965_v34, %v2522_v24  ;;  %v1027_v36 = vadd.f32 %v1026_v35, %v2522_v24  ;;  %v967_v39 = vpop.f32.mrb[34].mxu0  ;;  %v1028_v38 = vpop.f32.mrb[34].mxu1  ;;  %1562 = vmatprep.mubr.bf16.mxu0 %v1128_v56  ;;  %1618 = vmatprep.mubr.bf16.mxu1 %v1130_v27 }
 0x201   : > { %v1103_v40 = vmul.f32 %v2681_v0, %v964_v28  ;;  %v968_v7 = vadd.f32 %v967_v39, %v2524_v25  ;;  %v1029_v43 = vadd.f32 %v1028_v38, %v2524_v25  ;;  %v969_v41 = vpop.f32.mrb[35].mxu0  ;;  %v1030_v42 = vpop.f32.mrb[35].mxu1  ;;  %v1105_v29 = vmul.f32 %v2702_v8, %v1025_v32 }
 0x202   : > { %v1104_v60 = vmul.f32 %v2690_v61, %v966_v54  ;;  %v1106_v62 = vmul.f32 %v2695_v49, %v1027_v36  ;;  %v970_v63 = vadd.f32 %v969_v41, %v2524_v25  ;;  %v1031_v24 = vadd.f32 %v1030_v42, %v2524_v25 }
 0x203   : > { %v1111_v48 = vmul.f32 %v2681_v0, %v968_v7  ;;  %v1113_v6 = vmul.f32 %v2702_v8, %v1029_v43  ;;  %1906 = vmatpush1.bf16.xpose.msk.msra.mxu0 %vm2459_vm7, %v2026_v37  ;;  %1922 = vmatpush1.bf16.xpose.msk.msra.mxu1 %vm2463_vm8, %v2026_v37 }
 0x204   : > { %v1112_v9 = vmul.f32 %v2690_v61, %v970_v63  ;;  %v1114_v2 = vmul.f32 %v2695_v49, %v1031_v24  ;;  %v1413_v24 = vld [vmem:[%s2114_s21] sm:$0xff] }
 0x205   : > { %v1135_v1 = vpack.c.bf16 %v1111_v48, %v1103_v40  ;;  %v1137_v25 = vpack.c.bf16 %v1113_v6, %v1105_v29 }
 0x206   : > { %v973_v3 = vpop.f32.mrb[36].mxu0  ;;  %v1034_v4 = vpop.f32.mrb[36].mxu1  ;;  %v1136_v5 = vpack.c.bf16 %v1112_v9, %v1104_v60  ;;  %v1138_v10 = vpack.c.bf16 %v1114_v2, %v1106_v62 }
 0x207   : > { %v975_v11 = vpop.f32.mrb[37].mxu0  ;;  %v1036_v46 = vpop.f32.mrb[37].mxu1  ;;  %v974_v58 = vadd.f32 %v973_v3, %v2610_v19  ;;  %v1035_v52 = vadd.f32 %v1034_v4, %v2610_v19 }
 0x208   : > { %v976_v47 = vadd.f32 %v975_v11, %v2610_v19  ;;  %v1037_v55 = vadd.f32 %v1036_v46, %v2610_v19  ;;  %v977_v12 = vpop.f32.mrb[38].mxu0  ;;  %v1038_v15 = vpop.f32.mrb[38].mxu1 }
 0x209   : > { %v978_v57 = vpop.f32.mrb[39].mxu0  ;;  %v1039_v37 = vpop.f32.mrb[39].mxu1  ;;  %v1119_v59 = vmul.f32 %v2681_v0, %v974_v58  ;;  %v1415_v12 = vld [vmem:[%s2114_s21 + $0x10] sm:$0xff] }
 0x20a   : > { %v1120_v13 = vmul.f32 %v2690_v61, %v976_v47  ;;  %v1122_v51 = vmul.f32 %v2695_v49, %v1037_v55  ;;  %1563 = vmatmul.mubr.bf16.vlgmr.msra.gmra.mrb[52].mxu0 %v1127_v30  ;;  %1619 = vmatmul.mubr.bf16.vlgmr.msra.gmra.mrb[52].mxu1 %v1129_v22  ;;  %v1121_v61 = vmul.f32 %v2702_v8, %v1035_v52  ;;  %v1416_v52 = vld [vmem:[%s2114_s21 + $0x18] sm:$0xff] }
 0x20b   : > { %1570 = vmatprep.mubr.bf16.mxu0 %v1136_v5  ;;  %1626 = vmatprep.mubr.bf16.mxu1 %v1138_v10  ;;  %v1143_v33 = vpack.c.bf16 %v1119_v59, %v1119_v59 }
 0x20c   : > { %v1144_v14 = vpack.c.bf16 %v1120_v13, %v1120_v13  ;;  %v1146_v16 = vpack.c.bf16 %v1122_v51, %v1122_v51  ;;  %v1145_v49 = vpack.c.bf16 %v1121_v61, %v1121_v61 }
 0x212   : > { %1571 = vmatmul.mubr.bf16.gmra.mrb[56].mxu0 %v1135_v1  ;;  %1627 = vmatmul.mubr.bf16.gmra.mrb[56].mxu1 %v1137_v25  ;;  %v1414_v25 = vld [vmem:[%s2114_s21 + $0x8] sm:$0xff] }
 0x213   : > { %1578 = vmatprep.mubr.bf16.mxu0 %v1144_v14  ;;  %1634 = vmatprep.mubr.bf16.mxu1 %v1146_v16 }
 0x21a   : > { %1579 = vmatmul.mubr.bf16.gmra.mrb[60].mxu0 %v1143_v33  ;;  %1635 = vmatmul.mubr.bf16.gmra.mrb[60].mxu1 %v1145_v49 }
 0x2bc   : > { %v1452_v17 = vpop.f32.mrb[40].mxu0 }
 0x2bd   : > { %v1508_v44 = vpop.f32.mrb[40].mxu1  ;;  %v1454_v45 = vpop.f32.mrb[41].mxu0 }
 0x2be   : > { %v1509_v53 = vadd.f32 %v1508_v44, %v1452_v17  ;;  %v1510_v50 = vpop.f32.mrb[41].mxu1  ;;  %v1455_v19 = vpop.f32.mrb[42].mxu0  ;;  %v1417_v45 = vld [vmem:[%s2114_s21 + $0x20] sm:$0x1] }
 0x2bf   : > { %v1511_v31 = vpop.f32.mrb[42].mxu1  ;;  %v1457_v18 = vpop.f32.mrb[43].mxu0 }
 0x2c0   : > { %v1512_v20 = vadd.f32 %v1511_v31, %v1455_v19  ;;  %v1513_v21 = vpop.f32.mrb[43].mxu1 }
 0x2c4   : > { %v1460_v30 = vpop.f32.mrb[44].mxu0 }
 0x2c5   : > { %v1516_v22 = vpop.f32.mrb[44].mxu1  ;;  %v1462_v23 = vpop.f32.mrb[45].mxu0 }
 0x2c6   : > { %v1517_v0 = vadd.f32 %v1516_v22, %v1460_v30  ;;  %v1518_v26 = vpop.f32.mrb[45].mxu1  ;;  %v1463_v8 = vpop.f32.mrb[46].mxu0 }
 0x2c7   : > { %v1519_v56 = vpop.f32.mrb[46].mxu1  ;;  %v1465_v27 = vpop.f32.mrb[47].mxu0 }
 0x2c8   : > { %v1520_v28 = vadd.f32 %v1519_v56, %v1463_v8  ;;  %v1521_v32 = vpop.f32.mrb[47].mxu1 }
 0x2cc   : > { %v1468_v34 = vpop.f32.mrb[48].mxu0 }
 0x2cd   : > { %v1524_v35 = vpop.f32.mrb[48].mxu1  ;;  %v1470_v54 = vpop.f32.mrb[49].mxu0 }
 0x2ce   : > { %v1525_v36 = vadd.f32 %v1524_v35, %v1468_v34  ;;  %v1526_v39 = vpop.f32.mrb[49].mxu1  ;;  %v1471_v38 = vpop.f32.mrb[50].mxu0 }
 0x2cf   : > { %v1527_v40 = vpop.f32.mrb[50].mxu1  ;;  %v1472_v7 = vpop.f32.mrb[51].mxu0 }
 0x2d0   : > { %v1528_v43 = vpop.f32.mrb[51].mxu1 }
 0x2dd   : > { %v1564_v41 = vpop.f32.mrb[52].mxu0  ;;  %v1620_v42 = vpop.f32.mrb[52].mxu1 }
 0x2de   : > { %v1565_v60 = vadd.f32 %v1564_v41, %v1509_v53  ;;  %v1566_v62 = vpop.f32.mrb[53].mxu0  ;;  %v1622_v63 = vpop.f32.mrb[53].mxu1 }
 0x2df   : > { %v1567_v29 = vpop.f32.mrb[54].mxu0  ;;  %v1623_v48 = vpop.f32.mrb[54].mxu1 }
 0x2e0   : > { %v1621_v6 = vadd.f32 %v1620_v42, %v1565_v60  ;;  %v1568_v9 = vadd.f32 %v1567_v29, %v1512_v20  ;;  %v1569_v2 = vpop.f32.mrb[55].mxu0  ;;  %v1625_v1 = vpop.f32.mrb[55].mxu1 }
 0x2e2   : > { %v1642_v3 = vadd.f32 %v1621_v6, %v1413_v24  ;;  %v1624_v4 = vadd.f32 %v1623_v48, %v1568_v9 }
 0x2e4   : > { %1648 = vst.msk [vmem:[%s2114_s21] sm:$0xff] %vm1647_vm4, %v1642_v3  ;;  %v1643_v5 = vadd.f32 %v1624_v4, %v1414_v25 }
 0x2e5   : > { %v1572_v10 = vpop.f32.mrb[56].mxu0  ;;  %v1628_v11 = vpop.f32.mrb[56].mxu1 }
 0x2e6   : > { %1649 = vst.msk [vmem:[%s2114_s21 + $0x8] sm:$0xff] %vm1647_vm4, %v1643_v5  ;;  %v1573_v46 = vadd.f32 %v1572_v10, %v1517_v0  ;;  %v1574_v47 = vpop.f32.mrb[57].mxu0  ;;  %v1630_v55 = vpop.f32.mrb[57].mxu1 }
 0x2e7   : > { %v1575_v15 = vpop.f32.mrb[58].mxu0  ;;  %v1631_v57 = vpop.f32.mrb[58].mxu1 }
 0x2e8   : > { %v1629_v37 = vadd.f32 %v1628_v11, %v1573_v46  ;;  %v1576_v13 = vadd.f32 %v1575_v15, %v1520_v28  ;;  %v1577_v51 = vpop.f32.mrb[59].mxu0  ;;  %v1633_v58 = vpop.f32.mrb[59].mxu1 }
 0x2ea   : > { %v1644_v14 = vadd.f32 %v1629_v37, %v1415_v12  ;;  %v1632_v16 = vadd.f32 %v1631_v57, %v1576_v13 }
 0x2ec   : > { %1650 = vst.msk [vmem:[%s2114_s21 + $0x10] sm:$0xff] %vm1647_vm4, %v1644_v14  ;;  %v1645_v59 = vadd.f32 %v1632_v16, %v1416_v52 }
 0x2ed   : > { %v1580_v61 = vpop.f32.mrb[60].mxu0  ;;  %v1636_v33 = vpop.f32.mrb[60].mxu1 }
 0x2ee   : > { %1651 = vst.msk [vmem:[%s2114_s21 + $0x18] sm:$0xff] %vm1647_vm4, %v1645_v59  ;;  %v1581_v49 = vadd.f32 %v1580_v61, %v1525_v36  ;;  %v1582_v17 = vpop.f32.mrb[61].mxu0  ;;  %v1638_v44 = vpop.f32.mrb[61].mxu1 }
 0x2ef   : > { %v1583_v53 = vpop.f32.mrb[62].mxu0  ;;  %v1639_v50 = vpop.f32.mrb[62].mxu1 }
 0x2f0   : > { %v1637_v19 = vadd.f32 %v1636_v33, %v1581_v49  ;;  %v1584_v31 = vpop.f32.mrb[63].mxu0  ;;  %v1640_v18 = vpop.f32.mrb[63].mxu1 }
 0x2f2   : > { %v1646_v20 = vadd.f32 %v1637_v19, %v1417_v45 }
 0x2f4   : > { %1653 = vst.msk [vmem:[%s2114_s21 + $0x20] sm:$0x1] %vm1652_vm6, %v1646_v20 }
 0x2f5 PF: > { %s17_s28 = sadd.s32 1, %s2022_s28   ;;  %s2846_s24 = smov %s2014_s26 }
 0x2f6   : > { %p14_p8 = scmp.ge.s32.totalorder %s17_s28, 6   ;;  %s2847_s25 = smov %s2018_s27 }
 0x2f7   : > { %s2848_s26 = smov %s2851_s29  ;;  %s2849_s27 = smov %s2855_s30 }
 0x2f8   :  { %16 = sbr.rel (!%p14_p8) target bundleno = 3 (0x3), region = 88 }

</bundles_post_ra>
